<compile_context>
chip_gen: v7x
topology: tpu7x:2x2x1
jax: 0.10.0
libtpu: 0.0.40
codegen_flags: <defaults>
</compile_context>

<pallas_src>
import functools

import jax
import jax.numpy as jnp
from jax import lax
from jax.experimental import pallas as pl
from jax.experimental.pallas import tpu as pltpu

BF16 = jnp.bfloat16
F32 = jnp.float32


def _bottleneck_kernel(stride, TH, has_proj, use_im2col, *refs):
    if stride == 1:
        (xc_ref, xt_ref, xb_ref, w1_ref, b1_ref, w2_ref, b2_ref,
         w3_ref, b3_ref, out_ref, pad_ref) = refs
    else:
        (xc_ref, xt_ref, w1_ref, b1_ref, w2_ref, b2_ref,
         w3_ref, b3_ref, out_ref, ee_ref, eo_ref, oe_ref, oo_ref) = refs

    TS, W, Cin = xc_ref.shape            # TS = TH * stride core input rows
    P = b1_ref.shape[1]
    E = b3_ref.shape[1]
    Wo = W // stride
    h = pl.program_id(1)

    def conv1(xv):                       # (R, W, Cin) bf16 -> (R, W, P) f32 (bn folded) + relu
        R = xv.shape[0]
        o = jnp.dot(xv.reshape(R * W, Cin), w1_ref[...], preferred_element_type=F32)
        return jnp.maximum(o + b1_ref[...], 0.0).reshape(R, W, P)

    top_ok = (h > 0).astype(F32)         # is the row above this tile inside the image?

    # ---- conv1 (1x1) + bn1 + relu, per tile, stored into bf16 scratch -------
    if stride == 1:
        bot_ok = (h < pl.num_programs(1) - 1).astype(F32)
        pad_ref[:, 0:1, :] = jnp.zeros((TH + 2, 1, P), BF16)            # left zero pad
        pad_ref[:, W + 1:W + 2, :] = jnp.zeros((TH + 2, 1, P), BF16)    # right zero pad
        pad_ref[1:TH + 1, 1:W + 1, :] = conv1(xc_ref[...]).astype(BF16)
        pad_ref[0:1, 1:W + 1, :] = (conv1(xt_ref[...]) * top_ok).astype(BF16)
        pad_ref[TH + 1:TH + 2, 1:W + 1, :] = (conv1(xb_ref[...]) * bot_ok).astype(BF16)
        taps = [pad_ref[kh:kh + TH, kw:kw + Wo, :]
                for kh in range(3) for kw in range(3)]
        xs = xc_ref[...].reshape(TH * Wo, Cin)                          # shortcut input
    else:
        # Phase-split at store time: ee/eo/oe/oo hold the (even/odd padded-row)
        # x (even/odd padded-col) planes of the padded conv1 tile, so every
        # conv2 tap below is a contiguous static slice (no per-tile XLU split).
        xr = xc_ref[...].reshape(TH, 2, W, Cin)
        x_even, x_odd = xr[:, 0], xr[:, 1]                              # even / odd input rows
        c_odd = conv1(x_odd)                                            # -> even padded rows 1..TH
        c_evn = conv1(x_even)                                           # -> odd  padded rows 0..TH-1
        c_top = conv1(xt_ref[...]) * top_ok                             # -> even padded row 0
        ee_ref[:, 0:1, :] = jnp.zeros((TH + 1, 1, P), BF16)             # left zero pad (even cols)
        oe_ref[:, 0:1, :] = jnp.zeros((TH, 1, P), BF16)
        ee_ref[0:1, 1:Wo + 1, :] = c_top[:, 1::2, :].astype(BF16)
        eo_ref[0:1, :, :] = c_top[:, 0::2, :].astype(BF16)
        ee_ref[1:TH + 1, 1:Wo + 1, :] = c_odd[:, 1::2, :].astype(BF16)
        eo_ref[1:TH + 1, :, :] = c_odd[:, 0::2, :].astype(BF16)
        oe_ref[:, 1:Wo + 1, :] = c_evn[:, 1::2, :].astype(BF16)
        oo_ref[...] = c_evn[:, 0::2, :].astype(BF16)
        taps = [ee_ref[0:TH, 0:Wo, :], eo_ref[0:TH, 0:Wo, :], ee_ref[0:TH, 1:Wo + 1, :],
                oe_ref[0:TH, 0:Wo, :], oo_ref[0:TH, 0:Wo, :], oe_ref[0:TH, 1:Wo + 1, :],
                ee_ref[1:TH + 1, 0:Wo, :], eo_ref[1:TH + 1, 0:Wo, :],
                ee_ref[1:TH + 1, 1:Wo + 1, :]]
        xs = x_even[:, 0::2, :].reshape(TH * Wo, Cin)                   # shortcut input (even r/c)

    # ---- conv2 (3x3, stride, pad=1) + bn2 + relu ----------------------------
    if use_im2col:                       # one K=9P matmul (free lane concat when P % 128 == 0)
        patches = jnp.concatenate(taps, axis=-1).reshape(TH * Wo, 9 * P)
        o2 = jnp.dot(patches, w2_ref[...], preferred_element_type=F32)
    else:                                # small P: 9 accumulating dots, no lane concat
        o2 = jnp.zeros((TH * Wo, P), F32)
        for t, tap in enumerate(taps):
            o2 = o2 + jnp.dot(tap.reshape(TH * Wo, P), w2_ref[t * P:(t + 1) * P, :],
                              preferred_element_type=F32)
    o2 = jnp.maximum(o2 + b2_ref[...], 0.0)

    # ---- conv3 (1x1) + bn3, shortcut, final relu ----------------------------
    if has_proj:
        # fused: [o2, x] @ [w3; wsc] + (b3 + bsc)
        feat = jnp.concatenate([o2.astype(BF16), xs], axis=-1)
        out = jnp.dot(feat, w3_ref[...], preferred_element_type=F32) + b3_ref[...]
    else:
        out = (jnp.dot(o2.astype(BF16), w3_ref[...], preferred_element_type=F32)
               + b3_ref[...] + xs.astype(F32))
    out_ref[...] = jnp.maximum(out, 0.0).reshape(TH, Wo, E).astype(out_ref.dtype)


def _vmem_budget_and_limit():
    """Generation-aware sizing: 128 MiB parts (v5e/v6e) vs 64 MiB v7x."""
    try:
        cap = pltpu.get_tpu_info().vmem_capacity_bytes
    except Exception:
        cap = 64 << 20                      # conservative (v7x) fallback
    if cap >= (100 << 20):
        return 72 << 20, 100 << 20          # v5e / v6e
    return 28 << 20, 40 << 20               # v7x


def _pick_tile_rows(H, W, Cin, P, E, Ho, Wo, stride, budget_bytes):
    """Largest divisor of Ho whose per-step working set fits the budget,
    preferring tiles with (TH * Wo) % 8 == 0 (sublane-aligned reshapes)."""
    def est(th):
        ts = th * stride
        x_blk = 2 * ts * W * Cin * 2                 # double-buffered bf16 core rows
        halos = 2 * 2 * W * Cin * 2                  # two 1-row halo views
        out_blk = 2 * th * Wo * E * 2                # double-buffered bf16 output block
        scratch = (ts + 2) * (W + 2) * P * 2         # bf16 conv1 scratch (either layout)
        conv1_tmp = (ts + 2) * W * P * 4             # f32 conv1 values before the cast
        patches = th * Wo * 9 * P * 2                # bf16 taps / im2col values
        acc = th * Wo * (2 * P + 2 * E) * 4          # f32 accumulators (generous)
        weights = 2 * ((Cin * P + 9 * P * P + (P + Cin) * E) * 2 + 2 * (P + E) * 4)
        return x_blk + halos + out_blk + scratch + conv1_tmp + patches + acc + weights

    fits = [d for d in range(1, Ho + 1) if Ho % d == 0 and est(d) <= budget_bytes]
    if not fits:
        return 1                                     # sublane-sparse; correct but slow
    aligned = [d for d in fits if (d * Wo) % 8 == 0]
    return max(aligned) if aligned else max(fits)


def init_bottleneck_params(key, in_planes, planes, stride, expansion=4, eps=1e-5):
    """Parameters mirroring the PyTorch bottleneck block, with eval-mode
    BatchNorm (fresh stats) folded into weights (scale) + bias (shift)."""
    E = expansion * planes
    k1, k2, k3, k4 = jax.random.split(key, 4)

    def xavier_normal(k, shape):                     # torch layout (out, in, kh, kw)
        out_c, in_c, kh, kw = shape
        fan_in, fan_out = in_c * kh * kw, out_c * kh * kw
        std = (2.0 / (fan_in + fan_out)) ** 0.5
        return std * jax.random.normal(k, shape, F32)

    def fold(w_oihw, c_out):
        gamma = jnp.ones((c_out,), F32)
        beta = jnp.zeros((c_out,), F32)
        mean = jnp.zeros((c_out,), F32)
        var = jnp.ones((c_out,), F32)
        scale = gamma / jnp.sqrt(var + eps)
        shift = beta - mean * scale
        return w_oihw * scale[:, None, None, None], shift[None, :]

    w1, b1 = fold(xavier_normal(k1, (planes, in_planes, 1, 1)), planes)
    w2, b2 = fold(xavier_normal(k2, (planes, planes, 3, 3)), planes)
    w3, b3 = fold(xavier_normal(k3, (E, planes, 1, 1)), E)

    params = dict(
        w1=w1[:, :, 0, 0].T.astype(BF16),                           # (Cin, P)
        b1=b1,                                                      # (1, P) f32
        # (3,3,ci,co) -> (9P, P): row order (kh, kw, ci) matches in-kernel taps
        w2f=jnp.transpose(w2, (2, 3, 1, 0)).reshape(9 * planes, planes).astype(BF16),
        b2=b2,
        w3=w3[:, :, 0, 0].T.astype(BF16),                           # (P, E)
        b3=b3,
    )
    if stride != 1 or in_planes != E:
        wsc, bsc = fold(xavier_normal(k4, (E, in_planes, 1, 1)), E)
        params["wsc"] = wsc[:, :, 0, 0].T.astype(BF16)              # (Cin, E)
        params["bsc"] = bsc
    return params


def bottleneck_forward(x_nchw, params, stride, *, tile_rows=None, im2col=None):
    has_proj = "wsc" in params
    x = jnp.transpose(x_nchw, (0, 2, 3, 1)).astype(BF16)            # NCHW -> NHWC, bf16 storage
    N, H, W, Cin = x.shape
    P = params["b1"].shape[1]
    E = params["b3"].shape[1]

    assert stride in (1, 2)
    if stride == 2:
        assert H % 2 == 0 and W % 2 == 0, "stride-2 path expects even H, W"
        assert has_proj, "stride-2 bottleneck always has a projection shortcut"
    if not has_proj:
        assert Cin == E
    Ho, Wo = H // stride, W // stride

    budget, vmem_limit = _vmem_budget_and_limit()
    TH = tile_rows if tile_rows is not None else _pick_tile_rows(
        H, W, Cin, P, E, Ho, Wo, stride, budget)
    assert Ho % TH == 0, (Ho, TH)
    TS = TH * stride
    use_im2col = (P % 128 == 0) if im2col is None else im2col
    grid = (N, Ho // TH)

    # fold the projection shortcut into conv3: one matmul, one bias
    if has_proj:
        w3x = jnp.concatenate([params["w3"], params["wsc"]], axis=0)  # (P+Cin, E)
        b3x = params["b3"] + params["bsc"]
    else:
        w3x, b3x = params["w3"], params["b3"]

    def _const_spec(a):
        nd = a.ndim
        return pl.BlockSpec(a.shape, lambda n, h: (0,) * nd)

    in_specs = [
        pl.BlockSpec((None, TS, W, Cin), lambda n, h: (n, h, 0, 0)),             # core rows
        pl.BlockSpec((None, 1, W, Cin),
                     lambda n, h: (n, jnp.maximum(h * TS - 1, 0), 0, 0)),        # top halo row
    ]
    args = [x, x]
    if stride == 1:
        in_specs.append(pl.BlockSpec(
            (None, 1, W, Cin),
            lambda n, h: (n, jnp.minimum(h * TS + TS, H - 1), 0, 0)))            # bottom halo row
        args.append(x)
    weights = [params["w1"], params["b1"], params["w2f"], params["b2"], w3x, b3x]
    in_specs += [_const_spec(a) for a in weights]
    args += weights

    if stride == 1:
        scratch = [pltpu.VMEM((TH + 2, W + 2, P), BF16)]
    else:
        scratch = [pltpu.VMEM((TH + 1, Wo + 1, P), BF16),   # even rows, even cols
                   pltpu.VMEM((TH + 1, Wo, P), BF16),       # even rows, odd cols
                   pltpu.VMEM((TH, Wo + 1, P), BF16),       # odd rows, even cols
                   pltpu.VMEM((TH, Wo, P), BF16)]           # odd rows, odd cols

    flops = 2 * N * (H * W * Cin * P + Ho * Wo * 9 * P * P + Ho * Wo * P * E
                     + (Ho * Wo * Cin * E if has_proj else 0))
    bytes_acc = int(x.size) * 2 + N * Ho * Wo * E * 2 \
        + sum(int(a.size) * a.dtype.itemsize for a in weights)

    out_nhwc = pl.pallas_call(
        functools.partial(_bottleneck_kernel, stride, TH, has_proj, use_im2col),
        out_shape=jax.ShapeDtypeStruct((N, Ho, Wo, E), BF16),
        grid=grid,
        in_specs=in_specs,
        out_specs=pl.BlockSpec((None, TH, Wo, E), lambda n, h: (n, h, 0, 0)),
        scratch_shapes=scratch,
        compiler_params=pltpu.CompilerParams(
            dimension_semantics=("parallel", "parallel"),
            vmem_limit_bytes=vmem_limit),
        cost_estimate=pl.CostEstimate(flops=flops, transcendentals=0,
                                      bytes_accessed=bytes_acc),
    )(*args)
    return jnp.transpose(out_nhwc, (0, 3, 1, 2))                     # back to NCHW


def ref_forward(x_nchw, p, stride):
    """Pure-JAX reference with the same bf16-operand / f32-accumulate numerics."""
    x = jnp.transpose(x_nchw, (0, 2, 3, 1)).astype(BF16)
    P = p["b1"].shape[1]

    def conv(inp, w_hwio, s, pad):
        return lax.conv_general_dilated(
            inp.astype(BF16), w_hwio, (s, s), pad,
            dimension_numbers=("NHWC", "HWIO", "NHWC"),
            preferred_element_type=F32)

    o = jnp.maximum(conv(x, p["w1"][None, None], 1, "VALID") + p["b1"][0], 0.0)
    o = jnp.maximum(conv(o, p["w2f"].reshape(3, 3, P, P), stride,
                         [(1, 1), (1, 1)]) + p["b2"][0], 0.0)
    o = conv(o, p["w3"][None, None], 1, "VALID") + p["b3"][0]
    if "wsc" in p:
        sc = conv(x, p["wsc"][None, None], stride, "VALID") + p["bsc"][0]
    else:
        sc = x.astype(F32)
    out = jnp.maximum(o + sc, 0.0)
    return jnp.transpose(out, (0, 3, 1, 2))


if __name__ == "__main__":
    key = jax.random.PRNGKey(0)
    configs = [
        # (N, in_planes, H, W, planes, stride, tile_rows, im2col)
        (2, 4, 16, 16, 4, 1, 4, True),       # projection shortcut, stride 1, im2col path
        (2, 16, 16, 16, 8, 2, None, None),   # projection shortcut, stride 2
        (2, 16, 16, 16, 4, 1, None, None),   # identity shortcut
    ]
    for (N, cin, H, W, planes, stride, th, im2col) in configs:
        key, kx, kp = jax.random.split(key, 3)
        x = jax.random.normal(kx, (N, cin, H, W), jnp.float32)       # NCHW, like PyTorch
        params = init_bottleneck_params(kp, cin, planes, stride)

        out = jax.block_until_ready(
            bottleneck_forward(x, params, stride, tile_rows=th, im2col=im2col))
        ref = jax.block_until_ready(ref_forward(x, params, stride))

        assert out.shape == (N, 4 * planes, H // stride, W // stride), out.shape
        out_f = out.astype(jnp.float32)
        ref_f = ref.astype(jnp.bfloat16).astype(jnp.float32)         # kernel emits bf16
        err = float(jnp.max(jnp.abs(out_f - ref_f)))
        assert jnp.allclose(out_f, ref_f, rtol=2e-2, atol=2e-2), err
    print("KERNEL_OK")
</pallas_src>

<mosaic_0001>
module attributes {stable_mosaic.version = 11 : i64} {
  func.func @_bottleneck_kernel(%arg0: i32, %arg1: i32, %arg2: memref<1x4x16x4xbf16, #tpu.memory_space<vmem>>, %arg3: memref<1x1x16x4xbf16, #tpu.memory_space<vmem>>, %arg4: memref<1x1x16x4xbf16, #tpu.memory_space<vmem>>, %arg5: memref<4x4xbf16, #tpu.memory_space<vmem>>, %arg6: memref<1x4xf32, #tpu.memory_space<vmem>>, %arg7: memref<36x4xbf16, #tpu.memory_space<vmem>>, %arg8: memref<1x4xf32, #tpu.memory_space<vmem>>, %arg9: memref<8x16xbf16, #tpu.memory_space<vmem>>, %arg10: memref<1x16xf32, #tpu.memory_space<vmem>>, %arg11: memref<1x4x16x16xbf16, #tpu.memory_space<vmem>>, %arg12: memref<6x18x4xbf16, #tpu.memory_space<vmem>>) attributes {dimension_semantics = [#tpu.dimension_semantics<parallel>, #tpu.dimension_semantics<parallel>], iteration_bounds = array<i64: 2, 4>, scalar_prefetch = 0 : i64, scratch_operands = 1 : i64, tpu.core_type = #tpu.core_type<tc>, window_params = [{transform_indices = @transform_0, window_bounds = array<i64: 1, 4, 16, 4>}, {transform_indices = @transform_1, window_bounds = array<i64: 1, 1, 16, 4>}, {transform_indices = @transform_2, window_bounds = array<i64: 1, 1, 16, 4>}, {pipeline_mode = #tpu.pipeline_mode<synchronous>, transform_indices = @transform_3, window_bounds = array<i64: 4, 4>}, {pipeline_mode = #tpu.pipeline_mode<synchronous>, transform_indices = @transform_4, window_bounds = array<i64: 1, 4>}, {pipeline_mode = #tpu.pipeline_mode<synchronous>, transform_indices = @transform_5, window_bounds = array<i64: 36, 4>}, {pipeline_mode = #tpu.pipeline_mode<synchronous>, transform_indices = @transform_6, window_bounds = array<i64: 1, 4>}, {pipeline_mode = #tpu.pipeline_mode<synchronous>, transform_indices = @transform_7, window_bounds = array<i64: 8, 16>}, {pipeline_mode = #tpu.pipeline_mode<synchronous>, transform_indices = @transform_8, window_bounds = array<i64: 1, 16>}, {transform_indices = @transform_9, window_bounds = array<i64: 1, 4, 16, 16>}]} {
    %c0_i32 = arith.constant 0 : i32
    %0 = arith.cmpi sgt, %arg1, %c0_i32 : i32
    %1 = arith.extui %0 : i1 to i32
    %2 = arith.sitofp %1 : i32 to f32
    %c3_i32 = arith.constant 3 : i32
    %3 = arith.cmpi slt, %arg1, %c3_i32 : i32
    %4 = arith.extui %3 : i1 to i32
    %5 = arith.sitofp %4 : i32 to f32
    %cst = arith.constant 0.000000e+00 : bf16
    %6 = vector.broadcast %cst : bf16 to vector<6x1x4xbf16>
    %c0 = arith.constant 0 : index
    %c0_0 = arith.constant 0 : index
    %c0_1 = arith.constant 0 : index
    %7 = vector.load %arg12[%c0, %c0_0, %c0_1] : memref<6x18x4xbf16, #tpu.memory_space<vmem>>, vector<6x1x4xbf16>
    tpu.vector_store %arg12[%c0, %c0_0, %c0_1], %6 {strides = array<i32>} : memref<6x18x4xbf16, #tpu.memory_space<vmem>>, vector<6x1x4xbf16>,
    %cst_2 = arith.constant 0.000000e+00 : bf16
    %8 = vector.broadcast %cst_2 : bf16 to vector<6x1x4xbf16>
    %c0_3 = arith.constant 0 : index
    %c17 = arith.constant 17 : index
    %c0_4 = arith.constant 0 : index
    %9 = vector.load %arg12[%c0_3, %c17, %c0_4] : memref<6x18x4xbf16, #tpu.memory_space<vmem>>, vector<6x1x4xbf16>
    tpu.vector_store %arg12[%c0_3, %c17, %c0_4], %8 {strides = array<i32>} : memref<6x18x4xbf16, #tpu.memory_space<vmem>>, vector<6x1x4xbf16>,
    %c0_5 = arith.constant 0 : index
    %c0_6 = arith.constant 0 : index
    %c0_7 = arith.constant 0 : index
    %c0_8 = arith.constant 0 : index
    %10 = vector.load %arg2[%c0_5, %c0_6, %c0_7, %c0_8] : memref<1x4x16x4xbf16, #tpu.memory_space<vmem>>, vector<1x4x16x4xbf16>
    %11 = vector.shape_cast %10 : vector<1x4x16x4xbf16> to vector<4x16x4xbf16>
    %12 = vector.shape_cast %11 : vector<4x16x4xbf16> to vector<64x4xbf16>
    %c0_9 = arith.constant 0 : index
    %c0_10 = arith.constant 0 : index
    %13 = vector.load %arg5[%c0_9, %c0_10] : memref<4x4xbf16, #tpu.memory_space<vmem>>, vector<4x4xbf16>
    %cst_11 = arith.constant dense<0.000000e+00> : vector<64x4xf32>
    %14 = tpu.matmul %12, %13, %cst_11 {dimension_numbers = #tpu.dot_dimension_numbers<[1], [0], [0], [1], [0, 0, 1, 1], [], []>} : vector<64x4xbf16>, vector<4x4xbf16>, vector<64x4xf32> -> vector<64x4xf32>
    %c0_12 = arith.constant 0 : index
    %c0_13 = arith.constant 0 : index
    %15 = vector.load %arg6[%c0_12, %c0_13] : memref<1x4xf32, #tpu.memory_space<vmem>>, vector<1x4xf32>
    %16 = vector.broadcast %15 : vector<1x4xf32> to vector<64x4xf32>
    %17 = arith.addf %14, %16 : vector<64x4xf32>
    %cst_14 = arith.constant 0.000000e+00 : f32
    %18 = vector.broadcast %cst_14 : f32 to vector<64x4xf32>
    %19 = arith.maximumf %17, %18 : vector<64x4xf32>
    %20 = vector.shape_cast %19 : vector<64x4xf32> to vector<4x16x4xf32>
    %21 = arith.truncf %20 : vector<4x16x4xf32> to vector<4x16x4xbf16>
    %c1 = arith.constant 1 : index
    %c1_15 = arith.constant 1 : index
    %c0_16 = arith.constant 0 : index
    %22 = vector.load %arg12[%c1, %c1_15, %c0_16] : memref<6x18x4xbf16, #tpu.memory_space<vmem>>, vector<4x16x4xbf16>
    tpu.vector_store %arg12[%c1, %c1_15, %c0_16], %21 {strides = array<i32>} : memref<6x18x4xbf16, #tpu.memory_space<vmem>>, vector<4x16x4xbf16>,
    %c0_17 = arith.constant 0 : index
    %c0_18 = arith.constant 0 : index
    %c0_19 = arith.constant 0 : index
    %c0_20 = arith.constant 0 : index
    %23 = vector.load %arg3[%c0_17, %c0_18, %c0_19, %c0_20] : memref<1x1x16x4xbf16, #tpu.memory_space<vmem>>, vector<1x1x16x4xbf16>
    %24 = vector.shape_cast %23 : vector<1x1x16x4xbf16> to vector<1x16x4xbf16>
    %25 = vector.shape_cast %24 : vector<1x16x4xbf16> to vector<16x4xbf16>
    %c0_21 = arith.constant 0 : index
    %c0_22 = arith.constant 0 : index
    %26 = vector.load %arg5[%c0_21, %c0_22] : memref<4x4xbf16, #tpu.memory_space<vmem>>, vector<4x4xbf16>
    %cst_23 = arith.constant dense<0.000000e+00> : vector<16x4xf32>
    %27 = tpu.matmul %25, %26, %cst_23 {dimension_numbers = #tpu.dot_dimension_numbers<[1], [0], [0], [1], [0, 0, 1, 1], [], []>} : vector<16x4xbf16>, vector<4x4xbf16>, vector<16x4xf32> -> vector<16x4xf32>
    %c0_24 = arith.constant 0 : index
    %c0_25 = arith.constant 0 : index
    %28 = vector.load %arg6[%c0_24, %c0_25] : memref<1x4xf32, #tpu.memory_space<vmem>>, vector<1x4xf32>
    %29 = vector.broadcast %28 : vector<1x4xf32> to vector<16x4xf32>
    %30 = arith.addf %27, %29 : vector<16x4xf32>
    %cst_26 = arith.constant 0.000000e+00 : f32
    %31 = vector.broadcast %cst_26 : f32 to vector<16x4xf32>
    %32 = arith.maximumf %30, %31 : vector<16x4xf32>
    %33 = vector.shape_cast %32 : vector<16x4xf32> to vector<1x16x4xf32>
    %34 = vector.broadcast %2 : f32 to vector<1x16x4xf32>
    %35 = arith.mulf %33, %34 : vector<1x16x4xf32>
    %36 = arith.truncf %35 : vector<1x16x4xf32> to vector<1x16x4xbf16>
    %c0_27 = arith.constant 0 : index
    %c1_28 = arith.constant 1 : index
    %c0_29 = arith.constant 0 : index
    %37 = vector.load %arg12[%c0_27, %c1_28, %c0_29] : memref<6x18x4xbf16, #tpu.memory_space<vmem>>, vector<1x16x4xbf16>
    tpu.vector_store %arg12[%c0_27, %c1_28, %c0_29], %36 {strides = array<i32>} : memref<6x18x4xbf16, #tpu.memory_space<vmem>>, vector<1x16x4xbf16>,
    %c0_30 = arith.constant 0 : index
    %c0_31 = arith.constant 0 : index
    %c0_32 = arith.constant 0 : index
    %c0_33 = arith.constant 0 : index
    %38 = vector.load %arg4[%c0_30, %c0_31, %c0_32, %c0_33] : memref<1x1x16x4xbf16, #tpu.memory_space<vmem>>, vector<1x1x16x4xbf16>
    %39 = vector.shape_cast %38 : vector<1x1x16x4xbf16> to vector<1x16x4xbf16>
    %40 = vector.shape_cast %39 : vector<1x16x4xbf16> to vector<16x4xbf16>
    %c0_34 = arith.constant 0 : index
    %c0_35 = arith.constant 0 : index
    %41 = vector.load %arg5[%c0_34, %c0_35] : memref<4x4xbf16, #tpu.memory_space<vmem>>, vector<4x4xbf16>
    %cst_36 = arith.constant dense<0.000000e+00> : vector<16x4xf32>
    %42 = tpu.matmul %40, %41, %cst_36 {dimension_numbers = #tpu.dot_dimension_numbers<[1], [0], [0], [1], [0, 0, 1, 1], [], []>} : vector<16x4xbf16>, vector<4x4xbf16>, vector<16x4xf32> -> vector<16x4xf32>
    %c0_37 = arith.constant 0 : index
    %c0_38 = arith.constant 0 : index
    %43 = vector.load %arg6[%c0_37, %c0_38] : memref<1x4xf32, #tpu.memory_space<vmem>>, vector<1x4xf32>
    %44 = vector.broadcast %43 : vector<1x4xf32> to vector<16x4xf32>
    %45 = arith.addf %42, %44 : vector<16x4xf32>
    %cst_39 = arith.constant 0.000000e+00 : f32
    %46 = vector.broadcast %cst_39 : f32 to vector<16x4xf32>
    %47 = arith.maximumf %45, %46 : vector<16x4xf32>
    %48 = vector.shape_cast %47 : vector<16x4xf32> to vector<1x16x4xf32>
    %49 = vector.broadcast %5 : f32 to vector<1x16x4xf32>
    %50 = arith.mulf %48, %49 : vector<1x16x4xf32>
    %51 = arith.truncf %50 : vector<1x16x4xf32> to vector<1x16x4xbf16>
    %c5 = arith.constant 5 : index
    %c1_40 = arith.constant 1 : index
    %c0_41 = arith.constant 0 : index
    %52 = vector.load %arg12[%c5, %c1_40, %c0_41] : memref<6x18x4xbf16, #tpu.memory_space<vmem>>, vector<1x16x4xbf16>
    tpu.vector_store %arg12[%c5, %c1_40, %c0_41], %51 {strides = array<i32>} : memref<6x18x4xbf16, #tpu.memory_space<vmem>>, vector<1x16x4xbf16>,
    %c0_42 = arith.constant 0 : index
    %c0_43 = arith.constant 0 : index
    %c0_44 = arith.constant 0 : index
    %53 = vector.load %arg12[%c0_42, %c0_43, %c0_44] : memref<6x18x4xbf16, #tpu.memory_space<vmem>>, vector<4x16x4xbf16>
    %c0_45 = arith.constant 0 : index
    %c1_46 = arith.constant 1 : index
    %c0_47 = arith.constant 0 : index
    %54 = vector.load %arg12[%c0_45, %c1_46, %c0_47] : memref<6x18x4xbf16, #tpu.memory_space<vmem>>, vector<4x16x4xbf16>
    %c0_48 = arith.constant 0 : index
    %c2 = arith.constant 2 : index
    %c0_49 = arith.constant 0 : index
    %55 = vector.load %arg12[%c0_48, %c2, %c0_49] : memref<6x18x4xbf16, #tpu.memory_space<vmem>>, vector<4x16x4xbf16>
    %c1_50 = arith.constant 1 : index
    %c0_51 = arith.constant 0 : index
    %c0_52 = arith.constant 0 : index
    %56 = vector.load %arg12[%c1_50, %c0_51, %c0_52] : memref<6x18x4xbf16, #tpu.memory_space<vmem>>, vector<4x16x4xbf16>
    %c1_53 = arith.constant 1 : index
    %c1_54 = arith.constant 1 : index
    %c0_55 = arith.constant 0 : index
    %57 = vector.load %arg12[%c1_53, %c1_54, %c0_55] : memref<6x18x4xbf16, #tpu.memory_space<vmem>>, vector<4x16x4xbf16>
    %c1_56 = arith.constant 1 : index
    %c2_57 = arith.constant 2 : index
    %c0_58 = arith.constant 0 : index
    %58 = vector.load %arg12[%c1_56, %c2_57, %c0_58] : memref<6x18x4xbf16, #tpu.memory_space<vmem>>, vector<4x16x4xbf16>
    %c2_59 = arith.constant 2 : index
    %c0_60 = arith.constant 0 : index
    %c0_61 = arith.constant 0 : index
    %59 = vector.load %arg12[%c2_59, %c0_60, %c0_61] : memref<6x18x4xbf16, #tpu.memory_space<vmem>>, vector<4x16x4xbf16>
    %c2_62 = arith.constant 2 : index
    %c1_63 = arith.constant 1 : index
    %c0_64 = arith.constant 0 : index
    %60 = vector.load %arg12[%c2_62, %c1_63, %c0_64] : memref<6x18x4xbf16, #tpu.memory_space<vmem>>, vector<4x16x4xbf16>
    %c2_65 = arith.constant 2 : index
    %c2_66 = arith.constant 2 : index
    %c0_67 = arith.constant 0 : index
    %61 = vector.load %arg12[%c2_65, %c2_66, %c0_67] : memref<6x18x4xbf16, #tpu.memory_space<vmem>>, vector<4x16x4xbf16>
    %c0_68 = arith.constant 0 : index
    %c0_69 = arith.constant 0 : index
    %c0_70 = arith.constant 0 : index
    %c0_71 = arith.constant 0 : index
    %62 = vector.load %arg2[%c0_68, %c0_69, %c0_70, %c0_71] : memref<1x4x16x4xbf16, #tpu.memory_space<vmem>>, vector<1x4x16x4xbf16>
    %63 = vector.shape_cast %62 : vector<1x4x16x4xbf16> to vector<4x16x4xbf16>
    %64 = vector.shape_cast %63 : vector<4x16x4xbf16> to vector<64x4xbf16>
    %65 = tpu.concatenate %53, %54, %55, %56, %57, %58, %59, %60, %61 in 2 : vector<4x16x4xbf16>, vector<4x16x4xbf16>, vector<4x16x4xbf16>, vector<4x16x4xbf16>, vector<4x16x4xbf16>, vector<4x16x4xbf16>, vector<4x16x4xbf16>, vector<4x16x4xbf16>, vector<4x16x4xbf16> -> vector<4x16x36xbf16>
    %66 = vector.shape_cast %65 : vector<4x16x36xbf16> to vector<64x36xbf16>
    %c0_72 = arith.constant 0 : index
    %c0_73 = arith.constant 0 : index
    %67 = vector.load %arg7[%c0_72, %c0_73] : memref<36x4xbf16, #tpu.memory_space<vmem>>, vector<36x4xbf16>
    %cst_74 = arith.constant dense<0.000000e+00> : vector<64x4xf32>
    %68 = tpu.matmul %66, %67, %cst_74 {dimension_numbers = #tpu.dot_dimension_numbers<[1], [0], [0], [1], [0, 0, 1, 1], [], []>} : vector<64x36xbf16>, vector<36x4xbf16>, vector<64x4xf32> -> vector<64x4xf32>
    %c0_75 = arith.constant 0 : index
    %c0_76 = arith.constant 0 : index
    %69 = vector.load %arg8[%c0_75, %c0_76] : memref<1x4xf32, #tpu.memory_space<vmem>>, vector<1x4xf32>
    %70 = vector.broadcast %69 : vector<1x4xf32> to vector<64x4xf32>
    %71 = arith.addf %68, %70 : vector<64x4xf32>
    %cst_77 = arith.constant 0.000000e+00 : f32
    %72 = vector.broadcast %cst_77 : f32 to vector<64x4xf32>
    %73 = arith.maximumf %71, %72 : vector<64x4xf32>
    %74 = arith.truncf %73 : vector<64x4xf32> to vector<64x4xbf16>
    %75 = tpu.concatenate %74, %64 in 1 : vector<64x4xbf16>, vector<64x4xbf16> -> vector<64x8xbf16>
    %c0_78 = arith.constant 0 : index
    %c0_79 = arith.constant 0 : index
    %76 = vector.load %arg9[%c0_78, %c0_79] : memref<8x16xbf16, #tpu.memory_space<vmem>>, vector<8x16xbf16>
    %cst_80 = arith.constant dense<0.000000e+00> : vector<64x16xf32>
    %77 = tpu.matmul %75, %76, %cst_80 {dimension_numbers = #tpu.dot_dimension_numbers<[1], [0], [0], [1], [0, 0, 1, 1], [], []>} : vector<64x8xbf16>, vector<8x16xbf16>, vector<64x16xf32> -> vector<64x16xf32>
    %c0_81 = arith.constant 0 : index
    %c0_82 = arith.constant 0 : index
    %78 = vector.load %arg10[%c0_81, %c0_82] : memref<1x16xf32, #tpu.memory_space<vmem>>, vector<1x16xf32>
    %79 = vector.broadcast %78 : vector<1x16xf32> to vector<64x16xf32>
    %80 = arith.addf %77, %79 : vector<64x16xf32>
    %cst_83 = arith.constant 0.000000e+00 : f32
    %81 = vector.broadcast %cst_83 : f32 to vector<64x16xf32>
    %82 = arith.maximumf %80, %81 : vector<64x16xf32>
    %83 = vector.shape_cast %82 : vector<64x16xf32> to vector<4x16x16xf32>
    %84 = arith.truncf %83 : vector<4x16x16xf32> to vector<4x16x16xbf16>
    %c0_84 = arith.constant 0 : index
    %c0_85 = arith.constant 0 : index
    %c0_86 = arith.constant 0 : index
    %c0_87 = arith.constant 0 : index
    %85 = vector.load %arg11[%c0_84, %c0_85, %c0_86, %c0_87] : memref<1x4x16x16xbf16, #tpu.memory_space<vmem>>, vector<1x4x16x16xbf16>
    %86 = vector.shape_cast %85 : vector<1x4x16x16xbf16> to vector<4x16x16xbf16>
    %87 = vector.shape_cast %84 : vector<4x16x16xbf16> to vector<1x4x16x16xbf16>
    tpu.vector_store %arg11[%c0_84, %c0_85, %c0_86, %c0_87], %87 {strides = array<i32>} : memref<1x4x16x16xbf16, #tpu.memory_space<vmem>>, vector<1x4x16x16xbf16>,
    return
  }
  func.func @transform_0(%arg0: i32, %arg1: i32) -> (i32, i32, i32, i32) {
    %c0_i32 = arith.constant 0 : i32
    %c0_i32_0 = arith.constant 0 : i32
    %c0_i32_1 = arith.constant 0 : i32
    return %arg0, %arg1, %c0_i32, %c0_i32_0 : i32, i32, i32, i32
  }
  func.func @transform_1(%arg0: i32, %arg1: i32) -> (i32, i32, i32, i32) {
    %c4_i32 = arith.constant 4 : i32
    %0 = arith.muli %arg1, %c4_i32 : i32
    %c1_i32 = arith.constant 1 : i32
    %1 = arith.subi %0, %c1_i32 : i32
    %c0_i32 = arith.constant 0 : i32
    %2 = arith.maxsi %1, %c0_i32 : i32
    %c0_i32_0 = arith.constant 0 : i32
    %c0_i32_1 = arith.constant 0 : i32
    %c0_i32_2 = arith.constant 0 : i32
    return %arg0, %2, %c0_i32_0, %c0_i32_1 : i32, i32, i32, i32
  }
  func.func @transform_2(%arg0: i32, %arg1: i32) -> (i32, i32, i32, i32) {
    %c4_i32 = arith.constant 4 : i32
    %0 = arith.muli %arg1, %c4_i32 : i32
    %c4_i32_0 = arith.constant 4 : i32
    %1 = arith.addi %0, %c4_i32_0 : i32
    %c15_i32 = arith.constant 15 : i32
    %2 = arith.minsi %1, %c15_i32 : i32
    %c0_i32 = arith.constant 0 : i32
    %c0_i32_1 = arith.constant 0 : i32
    %c0_i32_2 = arith.constant 0 : i32
    return %arg0, %2, %c0_i32, %c0_i32_1 : i32, i32, i32, i32
  }
  func.func @transform_3(%arg0: i32, %arg1: i32) -> (i32, i32) {
    %c0_i32 = arith.constant 0 : i32
    %c0_i32_0 = arith.constant 0 : i32
    %c0_i32_1 = arith.constant 0 : i32
    return %c0_i32, %c0_i32_0 : i32, i32
  }
  func.func @transform_4(%arg0: i32, %arg1: i32) -> (i32, i32) {
    %c0_i32 = arith.constant 0 : i32
    %c0_i32_0 = arith.constant 0 : i32
    %c0_i32_1 = arith.constant 0 : i32
    return %c0_i32, %c0_i32_0 : i32, i32
  }
  func.func @transform_5(%arg0: i32, %arg1: i32) -> (i32, i32) {
    %c0_i32 = arith.constant 0 : i32
    %c0_i32_0 = arith.constant 0 : i32
    %c0_i32_1 = arith.constant 0 : i32
    return %c0_i32, %c0_i32_0 : i32, i32
  }
  func.func @transform_6(%arg0: i32, %arg1: i32) -> (i32, i32) {
    %c0_i32 = arith.constant 0 : i32
    %c0_i32_0 = arith.constant 0 : i32
    %c0_i32_1 = arith.constant 0 : i32
    return %c0_i32, %c0_i32_0 : i32, i32
  }
  func.func @transform_7(%arg0: i32, %arg1: i32) -> (i32, i32) {
    %c0_i32 = arith.constant 0 : i32
    %c0_i32_0 = arith.constant 0 : i32
    %c0_i32_1 = arith.constant 0 : i32
    return %c0_i32, %c0_i32_0 : i32, i32
  }
  func.func @transform_8(%arg0: i32, %arg1: i32) -> (i32, i32) {
    %c0_i32 = arith.constant 0 : i32
    %c0_i32_0 = arith.constant 0 : i32
    %c0_i32_1 = arith.constant 0 : i32
    return %c0_i32, %c0_i32_0 : i32, i32
  }
  func.func @transform_9(%arg0: i32, %arg1: i32) -> (i32, i32, i32, i32) {
    %c0_i32 = arith.constant 0 : i32
    %c0_i32_0 = arith.constant 0 : i32
    %c0_i32_1 = arith.constant 0 : i32
    return %arg0, %arg1, %c0_i32, %c0_i32_0 : i32, i32, i32, i32
  }
}

</mosaic_0001>

<bundles_post_ra>
// kernel: tpu_custom_call.1
= control target key start
LH: loop header
LB: loop body
LE: loop exit
PB: predicated region body
PF: predicated region fallthrough
CT: control target
= control target key end

     0   :  { %s3030_s0 = inlined_call_operand.vmem [shape: bf16[2,16,16,4], index: 0, kind: input, shape index: {}]   ;;  %s3031_s1 = inlined_call_operand.vmem [shape: bf16[2,16,16,4], index: 1, kind: input, shape index: {}]   ;;  %s3032_s2 = inlined_call_operand.vmem [shape: bf16[2,16,16,4], index: 2, kind: input, shape index: {}]   ;;  %s3033_s3 = inlined_call_operand.vmem [shape: bf16[4,4], index: 3, kind: input, shape index: {}]   ;;  %s3034_s4 = inlined_call_operand.vmem [shape: f32[1,4], index: 4, kind: input, shape index: {}]   ;;  %s3035_s5 = inlined_call_operand.vmem [shape: bf16[36,4], index: 5, kind: input, shape index: {}]   ;;  %s3036_s6 = inlined_call_operand.vmem [shape: f32[1,4], index: 6, kind: input, shape index: {}]   ;;  %s3037_s7 = inlined_call_operand.vmem [shape: bf16[8,16], index: 7, kind: input, shape index: {}]   ;;  %s3038_s8 = inlined_call_operand.vmem [shape: f32[1,16], index: 8, kind: input, shape index: {}]   ;;  %s3039_s9 = inlined_call_operand.hbm [shape: bf16[2,16,16,16], index: 9, kind: output, shape index: {}]  }
   0x1   :  { %3046 = sst [smem:[#allocation13_spill]] %s3030_s0 }
   0x2   :  { %14 = vsyncpa [#allocation4], 0 }
   0x3   :  { %16 = vsyncpa [#allocation4 + $0x1], 0  ;;  %s2452_s30 = smov 0   ;;  %s2454_s10 = smov 0  }
   0x4   :  { %s2456_s11 = smov 0   ;;  %s2458_s12 = smov 0  }
   0x5   :  { %s2460_s13 = smov 0   ;;  %s2462_s14 = smov 0  }
   0x6   :  { %s2464_s15 = smov 0   ;;  %s2466_s16 = smov 0  }
   0x7 LB: > { %3047 = sst [smem:[#allocation6_spill]] %s2368_s11  ;;  %s1942_s17 = sadd.s32 4294967295, %s2388_s16   ;;  %s2388_s16 = sphi %s2466_s16, %s22_s16   ;;  %s2384_s15 = sphi %s2464_s15, %s3072_s15   ;;  %s2380_s14 = sphi %s2462_s14, %s3071_s14   ;;  %s2376_s13 = sphi %s2460_s13, %s3070_s13   ;;  %s2372_s12 = sphi %s2458_s12, %s3069_s12   ;;  %s2368_s11 = sphi %s2456_s11, %s3068_s11   ;;  %s2364_s10 = sphi %s2454_s10, %s3074_s10   ;;  %s2360_s30 = sphi %s2452_s30, %s3073_s30  }
   0x8   : > { %3048 = sst [smem:[#allocation7_spill]] %s2380_s14  ;;  %s1943_s18 = sadd.s32 4294967294, %s2388_s16  }
   0x9   : > { %3049 = sst [smem:[#allocation8_spill]] %s2384_s15  ;;  %s31_s19 = sadd.s32 1, %s2380_s14 }
   0xa   : > { %p32_p0 = scmp.ge.s32.totalorder %s31_s19, 4  ;;  %s34_s20 = sadd.s32 1, %s2384_s15 }
   0xb   : > { %p279_p1 = scmp.ne.s32.totalorder %s2368_s11, %s2364_s10  ;;  %p280_p2 = scmp.eq.s32.totalorder %s1942_s17, 7 }
   0xc   : > { %s3076_s19 = smov (%p32_p0, %s31_s19), 0  ;;  %s3078_s20 = smov (!%p32_p0, %s34_s20), %s2384_s15 }
   0xd   : > { %3050 = sst [smem:[#allocation9_spill]] %s3076_s19  ;;  %s265_s21 = ssub.s32 %s2380_s14, %s3076_s19 }
   0xe   : > { %p2503_p3 = por %p280_p2, %p279_p1  ;;  %p36_p4 = scmp.ge.s32.totalorder %s3078_s20, 2 }
   0xf   : > { %p285_p5 = scmp.ne.s32.totalorder %s2364_s10, %s2360_s30  ;;  %p286_p6 = scmp.eq.s32.totalorder %s1943_s18, 7 }
  0x10   : > { %p1952_p7 = scmp.ge.s32.totalorder %s2388_s16, 1  ;;  %s3080_s20 = smov (%p36_p4, %s3078_s20), 0 }
  0x11   : > { %3052 = sst [smem:[#allocation10_spill]] %s3080_s20  ;;  %p2512_p8 = por %p286_p6, %p285_p5 }
  0x12   : > { %p376_p9 = scmp.lt.s32.totalorder %s2388_s16, 9  ;;  %s264_s24 = ssub.s32 %s2384_s15, %s3080_s20 }
  0x13   : > { %s3053_s23 = scalar_select %p2512_p8, 1, 0 }
  0x14   : > { %s269_s25 = sadd.s32 1, %s2368_s11  ;;  %s266_s26 = sor.u32 %s265_s21, %s264_s24 }
  0x15   : > { %3054 = sst [smem:[#allocation11_spill]] %s3053_s23  ;;  %p377_p10 = pnand %p1952_p7, %p376_p9 }
  0x16   : > { %p267_p11 = scmp.eq.s32.totalorder %s266_s26, 0  ;;  %v545_v0 = vld [vmem:[%s3033_s3] sm:$0x3] (!%p377_p10)  ;;  %vm586_vm0 = vcmask (!%p377_p10), 1041408   ;;  %s2527_s17 = sshll.u32 (!%p377_p10), %s2372_s12, 2  ;;  %v2390_v2 = vmov (!%p377_p10), 0.0  }
  0x17   : > { %380 = sbr.rel (%p377_p10) target bundleno = 916 (0x394), region = 56  ;;  %p444_p12 = scmp.lt.s32.totalorder (!%p377_p10), %s2376_s13, 1  ;;  %2160 = vmatprep.subr.msk.bf16.mxu0 (!%p377_p10), %vm586_vm0, %v545_v0  ;;  %v588_v1 = vsel (!%p377_p10), %vm586_vm0, %v545_v0, 0  ;;  %2124 = vmatprep.subr.bf16.mxu1 (!%p377_p10), %v2390_v2  ;;  %v803_v3 = vld [vmem:[%s3033_s3] sm:$0x3] (!%p377_p10)  ;;  %vm2391_vm1 = vmmov (!%p377_p10), 0  }
  0x18   : > { %s2521_s27 = scalar_select %p267_p11, %s2368_s11, %s269_s25  }
  0x19   : > { %p446_p13 = scmp.lt.s32.totalorder (!%p377_p10), %s2527_s17, 15  ;;  %2115 = vmatpush3.bf16.msra.mxu0 (!%p377_p10), %v588_v1  ;;  %v820_v4 = vsel (!%p377_p10), %vm586_vm0, %v803_v3, 0  ;;  %2126 = vmatprep.mubr.msk.bf16.mxu1 (!%p377_p10), %vm2391_vm1, %v2390_v2  ;;  %vm496_vm2 = vcmask (!%p377_p10), 24576   ;;  %vm497_vm3 = vsmask.f32 (!%p377_p10), 256  ;;  %s1959_s28 = sadd.s32 (!%p377_p10), 4294967295, %s2527_s17 }
  0x1a   : > { %3055 = sst [smem:[#allocation12_spill]] %s2521_s27  ;;  %2125 = vmatpush3.bf16.msra.mxu1 (!%p377_p10), %v820_v4  ;;  %v505_v5 = vld [vmem:[#allocation2 + $0x18] sm:$0x1] (!%p377_p10)  ;;  %vm2545_vm4 = vmand (!%p377_p10), %vm496_vm2, %vm497_vm3  ;;  %p456_p0 = scmp.gt.s32.totalorder (!%p377_p10), %s1959_s28, 0  ;;  %vm573_vm5 = vcmask (!%p377_p10), 31744   ;;  %vm770_vm8 = vcmask (!%p377_p10), 27648  }
  0x1b   : > { %2130 = vmatprep.subr.bf16.mxu1 (!%p377_p10), %v2390_v2  ;;  %v506_v7 = vsel (!%p377_p10), %vm2545_vm4, 0, %v505_v5  ;;  %p1960_p1 = scmp.lt.s32.totalorder (!%p377_p10), %s1959_s28, 15  ;;  %s3058_s0 = sld [smem:[#allocation13_spill]] (!%p377_p10)  ;;  %v903_v11 = vld [vmem:[%s3033_s3] sm:$0x3] (!%p377_p10)  ;;  %vm1160_vm12 = vcmask (!%p377_p10), 1046528  }
  0x1c   : > { %507 = vst [vmem:[#allocation2 + $0x18] sm:$0x1] (!%p377_p10), %v506_v7  ;;  %v920_v14 = vsel (!%p377_p10), %vm586_vm0, %v903_v11, 0  ;;  %vm517_vm6 = vsmask.f32 (!%p377_p10), 7938  ;;  %p490_p4 = scmp.gt.s32.totalorder (!%p377_p10), %s2372_s12, 0 }
  0x1d   : > { %vm2591_vm7 = vmand (!%p377_p10), %vm496_vm2, %vm517_vm6  ;;  %v502_v17 = vld [vmem:[#allocation2 + $0xc] sm:$0x1] (!%p377_p10)  ;;  %v525_v19 = vld [vmem:[#allocation2 + $0x20] sm:$0x1] (!%p377_p10)  ;;  %vm687_vm9 = vsmask.f32 (!%p377_p10), 4368 }
  0x1e   : > { %s445_s24 = scalar_select %p444_p12, %s2376_s13, 1  ;;  %v503_v18 = vsel %vm2545_vm4, 0, %v502_v17  ;;  %v526_v20 = vsel %vm2591_vm7, 0, %v525_v19  ;;  %v522_v21 = vld [vmem:[#allocation2 + $0x14] sm:$0x1]  ;;  %vm2631_vm10 = vmand %vm770_vm8, %vm517_vm6  ;;  %vm1445_vm14 = vcmask 64512  }
  0x1f   : > { %s447_s25 = scalar_select %p446_p13, %s2527_s17, 15  ;;  %504 = vst [vmem:[#allocation2 + $0xc] sm:$0x1] %v503_v18  ;;  %527 = vst [vmem:[#allocation2 + $0x20] sm:$0x1] %v526_v20  ;;  %v523_v22 = vsel %vm2591_vm7, 0, %v522_v21 }
  0x20   : > { %s2540_s26 = sshll.u32 %s445_s24, 5  ;;  %s472_s24 = sadd.s32 4, %s2527_s17  ;;  %524 = vst [vmem:[#allocation2 + $0x14] sm:$0x1] %v523_v22  ;;  %v499_v23 = vld [vmem:[#allocation2] sm:$0x1]  ;;  %vm2638_vm11 = vmor %vm497_vm3, %vm687_vm9 }
  0x21   : > { %s1955_s29 = sshll.u32 %s447_s25, 1  ;;  %p2558_p2 = scmp.lt.s32.totalorder %s472_s24, 15  ;;  %v500_v24 = vsel %vm2545_vm4, 0, %v499_v23  ;;  %v519_v25 = vld [vmem:[#allocation2 + $0x8] sm:$0x1]  ;;  %vm1454_vm15 = vcmask 97280  }
  0x22   : > { %s450_s18 = sadd.s32 %s2540_s26, %s1955_s29  ;;  %s3082_s28 = smov (!%p456_p0, %s1959_s28), 0  ;;  %501 = vst [vmem:[#allocation2] sm:$0x1] %v500_v24  ;;  %v520_v26 = vsel %vm2591_vm7, 0, %v519_v25  ;;  %v511_v27 = vld [vmem:[#allocation2 + $0x30] sm:$0x1] }
  0x23   : > { %s1957_s21 = sshll.u32 %s450_s18, 2  ;;  %s3084_s24 = smov (!%p2558_p2, %s472_s24), 15  ;;  %521 = vst [vmem:[#allocation2 + $0x8] sm:$0x1] %v520_v26  ;;  %v508_v28 = vld [vmem:[#allocation2 + $0x24] sm:$0x1] }
  0x24   : > { %s2556_s15 = scalar_lea.vmem %s3058_s0, %s1957_s21  ;;  %s3086_s28 = smov (!%p1960_p1, %s3082_s28), 15  ;;  %v512_v29 = vsel %vm2545_vm4, 0, %v511_v27  ;;  %v509_v30 = vsel %vm2545_vm4, 0, %v508_v28  ;;  %v531_v31 = vld [vmem:[#allocation2 + $0x38] sm:$0x1]  ;;  %vm1490_vm2 = vcmask 228352  }
  0x25   : > { %v2245_v8 = vld [vmem:[%s2556_s15] sm:$0xff]   ;;  %v2246_v9 = vld [vmem:[%s2556_s15 + $0x8] sm:$0xff]   ;;  %v2248_v10 = vld [vmem:[%s2556_s15 + $0x10] sm:$0xff]   ;;  %s3088_s24 = smov (!%p2558_p2, %s3084_s24), 15  ;;  %s1965_s17 = sshll.u32 %s3086_s28, 1  ;;  %v532_v33 = vsel %vm2591_vm7, 0, %v531_v31 }
  0x26   : > { %2116 = vmatprep.mubr.msk.bf16.mxu0 %vm573_vm5, %v2245_v8  ;;  %s464_s29 = sadd.s32 %s1965_s17, %s2540_s26  ;;  %s1972_s18 = sshll.u32 %s3088_s24, 1  ;;  %v2249_v12 = vld [vmem:[%s2556_s15 + $0x18] sm:$0xff]   ;;  %513 = vst [vmem:[#allocation2 + $0x30] sm:$0x1] %v512_v29  ;;  %510 = vst [vmem:[#allocation2 + $0x24] sm:$0x1] %v509_v30 }
  0x27   : > { %2117 = vmatmul.mubr.msk.bf16.vlgmr.msra.gmra.mrb[0].mxu0 %vm573_vm5, %v2246_v9  ;;  %s1967_s21 = sshll.u32 %s464_s29, 2  ;;  %s481_s0 = sadd.s32 %s1972_s18, %s2540_s26  ;;  %v528_v32 = vld [vmem:[#allocation2 + $0x2c] sm:$0x1]  ;;  %533 = vst [vmem:[#allocation2 + $0x38] sm:$0x1] %v532_v33  ;;  %vm1481_vm3 = vcmask 195584  }
  0x28   : > { %2120 = vmatprep.mubr.msk.bf16.mxu0 %vm573_vm5, %v2248_v10  ;;  %s466_s11 = scalar_lea.vmem %s3031_s1, %s1967_s21  ;;  %s1974_s23 = sshll.u32 %s481_s0, 2  ;;  %v529_v34 = vsel %vm2591_vm7, 0, %v528_v32  ;;  %v514_v35 = vld [vmem:[#allocation2 + $0x3c] sm:$0x1]  ;;  %v534_v37 = vld [vmem:[#allocation2 + $0x44] sm:$0x1] }
  0x29   : > { %v2247_v13 = vld [vmem:[%s466_s11] sm:$0xff]   ;;  %s483_s25 = scalar_lea.vmem %s3032_s2, %s1974_s23  ;;  %530 = vst [vmem:[#allocation2 + $0x2c] sm:$0x1] %v529_v34  ;;  %v515_v36 = vsel %vm2545_vm4, 0, %v514_v35  ;;  %v535_v38 = vsel %vm2591_vm7, 0, %v534_v37  ;;  %p493_p5 = scmp.lt.s32.totalorder %s2372_s12, 3 }
  0x2a   : > { %2127 = vmatmul.mubr.msk.bf16.vlgmr.msra.gmra.mrb[0].mxu1 %vm573_vm5, %v2247_v13  ;;  %v2250_v15 = vld [vmem:[%s483_s25] sm:$0xff]   ;;  %516 = vst [vmem:[#allocation2 + $0x3c] sm:$0x1] %v515_v36  ;;  %536 = vst [vmem:[#allocation2 + $0x44] sm:$0x1] %v535_v38  ;;  %s2392_s28 = smov 24  }
  0x2b   : > { %2131 = vmatpush3.bf16.msra.mxu1 %v920_v14  ;;  %2132 = vmatprep.mubr.msk.bf16.mxu1 %vm2391_vm1, %v2390_v2  ;;  %v2621_v39 = vld [vmem:[%s3034_s4] ss:$0 sm:$0xff]  ;;  %s491_s14 = scalar_select %p490_p4, 1, 0  ;;  %v780_v59 = vld [vmem:[#allocation2 + $0x18] sm:$0xf] }
  0x2c   : > { %v772_v18 = vld [vmem:[#allocation2 + $0xc] sm:$0xf]  ;;  %v784_v25 = vld [vmem:[#allocation2 + $0x20] sm:$0x1]  ;;  %v777_v31 = vld [vmem:[#allocation2 + $0x14] sm:$0x1] }
  0x2d   : > { %s492_s23 = scvt.s32.f32 %s491_s14  ;;  %s2393_s24 = smov 12   ;;  %vm1091_vm13 = vsmask.f32 7424  ;;  %vm1472_vm1 = vcmask 162816   ;;  %vm1535_vm6 = vcmask 293888   ;;  %vm1680_vm7 = vcmask 1043456  }
  0x2e   : > { %s2667_s27 = scalar_select %p493_p5, 1, 0 }
  0x2f   : > { %2121 = vmatmul.mubr.msk.bf16.gmra.mrb[4].mxu0 %vm573_vm5, %v2249_v12  ;;  %v865_v53 = vstv %s492_s23  ;;  %s2394_s17 = smov 20   ;;  %s2395_s29 = smov 32  }
  0x30   : > { %s495_s26 = scvt.s32.f32 %s2667_s27  ;;  %s2396_s18 = smov 8  }
  0x31   : > { %s2397_s21 = smov 16   ;;  %s2398_s19 = smov 28  }
  0x32   : > { %2133 = vmatmul.mubr.msk.bf16.vlgmr.msra.gmra.mrb[4].mxu1 %vm573_vm5, %v2250_v15  ;;  %s2399_s20 = smov 4   ;;  %s2092_s25 = sshll.u32 %s2372_s12, 3 }
  0x33   : > { %s2066_s0 = sshll.u32 %s2376_s13, 5 }
  0x34   : > { %s1812_s11 = sadd.s32 %s2092_s25, %s2066_s0 }
  0x35   : > { %s2067_s12 = sshll.u32 %s1812_s11, 6 }
  0x36   : > { %s2969_s27 = scalar_lea.hbm %s3039_s9, %s2067_s12 }
  0xfa   : > { %v2118_v40 = vpop.f32.mrb[0].mxu0 }
  0xfb   : > { %v633_v41 = vadd.f32 %v2118_v40, %v2621_v39  ;;  %v624_v42 = vpop.f32.mrb[1].mxu0 }
  0xfc   : > { %v625_v43 = vadd.f32 %v2621_v39, %v624_v42  ;;  %v2119_v44 = vpop.f32.mrb[2].mxu0 }
  0xfd   : > { %v657_v45 = vmax.f32 %v633_v41, 0.0  ;;  %v636_v46 = vadd.f32 %v2119_v44, %v2621_v39  ;;  %v627_v47 = vpop.f32.mrb[3].mxu0  ;;  %v856_v58 = vpop.f32.mrb[0].mxu1 }
  0xfe   : > { %v655_v48 = vmax.f32 %v625_v43, 0.0  ;;  %v628_v49 = vadd.f32 %v2621_v39, %v627_v47  ;;  %v857_v62 = vadd.f32 %v2621_v39, %v856_v58  ;;  %v2128_v0 = vpop.f32.mrb[1].mxu1 }
  0xff   : > { %v2074_v50 = vpack.c.bf16 %v657_v45, %v657_v45  ;;  %v658_v51 = vmax.f32 %v636_v46, 0.0  ;;  %v859_v5 = vpop.f32.mrb[2].mxu1 }
 0x100   : > { %v2072_v52 = vpack.c.bf16 %v655_v48, %v655_v48  ;;  %v656_v54 = vmax.f32 %v628_v49, 0.0  ;;  %v863_v11 = vmax.f32 %v857_v62, 0.0  ;;  %v2129_v14 = vpop.f32.mrb[3].mxu1  ;;  %v860_v20 = vadd.f32 %v2621_v39, %v859_v5 }
 0x101   : > { %v707_v55 = vshrl.u32 %v2074_v50, 16  ;;  %v710_v56 = vshll.u32 %v2074_v50, 16  ;;  %v2075_v57 = vpack.c.bf16 %v658_v51, %v658_v51 }
 0x102   : > { %v690_v60 = vshrl.u32 %v2072_v52, 16  ;;  %v693_v61 = vshll.u32 %v2072_v52, 16  ;;  %v2073_v63 = vpack.c.bf16 %v656_v54, %v656_v54  ;;  %v2122_v1 = vpop.f32.mrb[4].mxu0  ;;  %v866_v26 = vmul.f32 %v865_v53, %v863_v11 }
 0x103   : > { %v709_v2 = vrot.slane %v707_v55, 7  ;;  %v715_v3 = vshrl.u32 %v2075_v57, 16  ;;  %v718_v4 = vshll.u32 %v2075_v57, 16  ;;  %v649_v7 = vadd.f32 %v2122_v1, %v2621_v39  ;;  %v640_v8 = vpop.f32.mrb[5].mxu0  ;;  %v894_v57 = vld [vmem:[#allocation2] sm:$0xf] }
 0x104   : > { %v692_v10 = vrot.slane %v690_v60, 7  ;;  %v698_v12 = vshrl.u32 %v2073_v63, 16  ;;  %v701_v13 = vshll.u32 %v2073_v63, 16  ;;  %v2123_v15 = vpop.f32.mrb[6].mxu0  ;;  %v864_v32 = vmax.f32 %v860_v20, 0.0 }
 0x105   : > { %v712_v16 = vor.u32 %v710_v56, %v709_v2  ;;  %v713_v17 = vrot.slane %v709_v2, 4  ;;  %v717_v19 = vrot.slane %v715_v3, 7  ;;  %v643_v21 = vpop.f32.mrb[7].mxu0  ;;  %v2080_v34 = vpack.c.bf16 %v866_v26, %v866_v26  ;;  %v956_v42 = vpop.f32.mrb[4].mxu1  ;;  %v898_v63 = vld [vmem:[#allocation2 + $0x8] sm:$0x1] }
 0x106   : > { %v695_v22 = vor.u32 %v693_v61, %v692_v10  ;;  %v696_v23 = vrot.slane %v692_v10, 4  ;;  %v700_v27 = vrot.slane %v698_v12, 7  ;;  %v867_v40 = vmul.f32 %v865_v53, %v864_v32  ;;  %v2134_v47 = vpop.f32.mrb[5].mxu1  ;;  %v787_v26 = vld [vmem:[#allocation2 + $0x24] sm:$0xf] }
 0x107   : > { %v781_v28 = vsel %vm2631_vm10, %v712_v16, %v780_v59  ;;  %v720_v29 = vor.u32 %v718_v4, %v717_v19  ;;  %v722_v30 = vrot.slane %v717_v19, 4  ;;  %v661_v41 = vmax.f32 %v649_v7, 0.0  ;;  %v2659_v52 = vpop.f32.mrb[6].mxu1 }
 0x108   : > { %782 = vst [vmem:[#allocation2 + $0x18] sm:$0xf] %v781_v28  ;;  %v773_v33 = vsel %vm2631_vm10, %v695_v22, %v772_v18  ;;  %v703_v35 = vor.u32 %v701_v13, %v700_v27  ;;  %v705_v36 = vrot.slane %v700_v27, 4  ;;  %v875_v43 = vshrl.u32 %v2080_v34, 16  ;;  %v2135_v56 = vpop.f32.mrb[7].mxu1 }
 0x109   : > { %774 = vst [vmem:[#allocation2 + $0xc] sm:$0xf] %v773_v33  ;;  %v721_v37 = vsel %vm2638_vm11, %v713_v17, %v720_v29  ;;  %v785_v38 = vsel %vm2545_vm4, %v722_v30, %v784_v25  ;;  %v878_v44 = vshll.u32 %v2080_v34, 16  ;;  %v2081_v48 = vpack.c.bf16 %v867_v40, %v867_v40  ;;  %v798_v27 = vld [vmem:[#allocation2 + $0x38] sm:$0x1] }
 0x10a   : > { %783 = vst.msk [vmem:[#allocation2 + $0x1c] sm:$0xf] %vm770_vm8, %v721_v37  ;;  %786 = vst [vmem:[#allocation2 + $0x20] sm:$0x1] %v785_v38  ;;  %v704_v45 = vsel %vm2638_vm11, %v696_v23, %v703_v35  ;;  %v778_v46 = vsel %vm2545_vm4, %v705_v36, %v777_v31  ;;  %v2078_v49 = vpack.c.bf16 %v661_v41, %v661_v41  ;;  %v877_v53 = vrot.slane %v875_v43, 7 }
 0x10b   : > { %776 = vst.msk [vmem:[#allocation2 + $0x10] sm:$0xf] %vm770_vm8, %v704_v45  ;;  %779 = vst [vmem:[#allocation2 + $0x14] sm:$0x1] %v778_v46  ;;  %v641_v50 = vadd.f32 %v2621_v39, %v640_v8  ;;  %v652_v51 = vadd.f32 %v2123_v15, %v2621_v39  ;;  %v644_v54 = vadd.f32 %v2621_v39, %v643_v21  ;;  %v883_v58 = vshrl.u32 %v2081_v48, 16 }
 0x10c   : > { %v2663_v55 = vadd.f32 %v2621_v39, %v956_v42  ;;  %v886_v59 = vshll.u32 %v2081_v48, 16  ;;  %v741_v60 = vshrl.u32 %v2078_v49, 16  ;;  %v744_v61 = vshll.u32 %v2078_v49, 16  ;;  %v794_v8 = vld [vmem:[#allocation2 + $0x30] sm:$0xf] }
 0x10d   : > { %v880_v62 = vor.u32 %v878_v44, %v877_v53  ;;  %v659_v0 = vmax.f32 %v641_v50, 0.0  ;;  %v662_v1 = vmax.f32 %v652_v51, 0.0  ;;  %v881_v2 = vrot.slane %v877_v53, 4  ;;  %v791_v46 = vld [vmem:[#allocation2 + $0x2c] sm:$0x1] }
 0x10e   : > { %v885_v3 = vrot.slane %v883_v58, 7  ;;  %v743_v4 = vrot.slane %v741_v60, 7  ;;  %v660_v5 = vmax.f32 %v644_v54, 0.0  ;;  %v963_v17 = vmax.f32 %v2663_v55, 0.0 }
 0x10f   : > { %v895_v7 = vsel %vm2631_vm10, %v880_v62, %v894_v57  ;;  %v2076_v10 = vpack.c.bf16 %v659_v0, %v659_v0  ;;  %v2079_v11 = vpack.c.bf16 %v662_v1, %v662_v1  ;;  %v1035_v29 = vld [vmem:[#allocation2 + $0x18] sm:$0xf]  ;;  %v965_v55 = vstv %s495_s26 }
 0x110   : > { %896 = vst [vmem:[#allocation2] sm:$0xf] %v895_v7  ;;  %v888_v12 = vor.u32 %v886_v59, %v885_v3  ;;  %v890_v13 = vrot.slane %v885_v3, 4  ;;  %v746_v14 = vor.u32 %v744_v61, %v743_v4  ;;  %v2077_v28 = vpack.c.bf16 %v660_v5, %v660_v5  ;;  %v1020_v30 = vld [vmem:[#allocation2 + $0x18] sm:$0xf] }
 0x111   : > { %v1036_v15 = vld [vmem:[#allocation2 + $0x1c] sm:$0xf]  ;;  %v724_v18 = vshrl.u32 %v2076_v10, 16  ;;  %v727_v19 = vshll.u32 %v2076_v10, 16  ;;  %v749_v20 = vshrl.u32 %v2079_v11, 16  ;;  %v752_v21 = vshll.u32 %v2079_v11, 16 }
 0x112   : > { %v1021_v16 = vld [vmem:[#allocation2 + $0x1c] sm:$0xf]  ;;  %v889_v22 = vsel %vm2638_vm11, %v881_v2, %v888_v12  ;;  %v899_v23 = vsel %vm2545_vm4, %v890_v13, %v898_v63  ;;  %v795_v25 = vsel %vm2631_vm10, %v746_v14, %v794_v8  ;;  %v1031_v31 = vld [vmem:[#allocation2 + $0x18] sm:$0xe]  ;;  %v747_v32 = vrot.slane %v743_v4, 4 }
 0x113   : > { %897 = vst.msk [vmem:[#allocation2 + $0x4] sm:$0xf] %vm770_vm8, %v889_v22  ;;  %900 = vst [vmem:[#allocation2 + $0x8] sm:$0x1] %v899_v23  ;;  %v726_v33 = vrot.slane %v724_v18, 7  ;;  %v751_v34 = vrot.slane %v749_v20, 7  ;;  %v2680_v35 = vcombine.low %v1035_v29, %v1036_v15  ;;  %v2684_v41 = vcombine.low %v1020_v30, %v1021_v16 }
 0x114   : > { %796 = vst [vmem:[#allocation2 + $0x30] sm:$0xf] %v795_v25  ;;  %v2682_v36 = vld [vmem:[#allocation2 + $0x20] ss:$0 sps:$4 sm:$0x11]   ;;  %v732_v37 = vshrl.u32 %v2077_v28, 16  ;;  %v2023_v42 = vcombine.low %v1031_v31, %v1021_v16  ;;  %v960_v2 = vadd.f32 %v2621_v39, %v2659_v52  ;;  %v966_v4 = vmul.f32 %v965_v55, %v963_v17 }
 0x115   : > { %v735_v38 = vshll.u32 %v2077_v28, 16  ;;  %v1047_v40 = vld [vmem:[#allocation2 + $0x18] sm:$0xe]  ;;  %v729_v43 = vor.u32 %v727_v19, %v726_v33  ;;  %v754_v44 = vor.u32 %v752_v21, %v751_v34  ;;  %v756_v45 = vrot.slane %v751_v34, 4  ;;  %1329 = vrot.lane.b32.xlu0 %v2680_v35, %s2392_s28  ;;  %v1018_v48 = vld [vmem:[#allocation2 + $0xc] sm:$0xf]  ;;  %1203 = vrot.lane.b32.xlu1 %v2684_v41, %s2393_s24 }
 0x116   : > { %v2034_v47 = vcombine.low %v1047_v40, %v1036_v15  ;;  %v2688_v49 = vld [vmem:[#allocation2 + $0x10] sm:$0xf]  ;;  %v2690_v50 = vld [vmem:[#allocation2 + $0x20] ss:$0 sps:$4 sm:$0x11]   ;;  %v730_v51 = vrot.slane %v726_v33, 4  ;;  %v2082_v16 = vpack.c.bf16 %v966_v4, %v966_v4 }
 0x117   : > { %v734_v53 = vrot.slane %v732_v37, 7  ;;  %v1292_v54 = vrot.slane %v2023_v42, 1  ;;  %v788_v56 = vsel %vm2631_vm10, %v729_v43, %v787_v26  ;;  %v755_v57 = vsel %vm2638_vm11, %v747_v32, %v754_v44  ;;  %v2701_v60 = vld [vmem:[#allocation2 + $0x10] sm:$0xf]  ;;  %v1015_v1 = vld [vmem:[#allocation2 + $0xc] sm:$0xe] }
 0x118   : > { %v799_v58 = vsel %vm2545_vm4, %v756_v45, %v798_v27  ;;  %v1293_v59 = vrot.slane %v2682_v36, 1  ;;  %v2703_v61 = vld [vmem:[#allocation2 + $0x14] ss:$0 sps:$4 sm:$0x11]   ;;  %789 = vst [vmem:[#allocation2 + $0x24] sm:$0xf] %v788_v56  ;;  %v2707_v0 = vcombine.low %v1018_v48, %v2688_v49  ;;  %v2011_v39 = vcombine.low %v1015_v1, %v2701_v60 }
 0x119   : > { %797 = vst.msk [vmem:[#allocation2 + $0x34] sm:$0xf] %vm770_vm8, %v755_v57  ;;  %800 = vst [vmem:[#allocation2 + $0x38] sm:$0x1] %v799_v58  ;;  %v737_v62 = vor.u32 %v735_v38, %v734_v53  ;;  %v739_v63 = vrot.slane %v734_v53, 4  ;;  %v1417_v5 = vrot.slane %v2034_v47, 1 }
 0x11a   : > { %v1294_v3 = vsel %vm1160_vm12, %v1292_v54, %v1293_v59  ;;  %v1418_v7 = vrot.slane %v2690_v50, 1  ;;  %v1007_v8 = vld [vmem:[#allocation2 + $0x1c] sm:$0xf]  ;;  %v1352_v12 = vshll.u32 %v2680_v35, 16  ;;  %v1030_v13 = vld [vmem:[#allocation2 + $0xc] sm:$0xe]  ;;  %1201 = vrot.lane.b32.xlu0 %v2707_v0, %s2393_s24 }
 0x11b   : > { %v738_v10 = vsel %vm2638_vm11, %v730_v51, %v737_v62  ;;  %v792_v11 = vsel %vm2545_vm4, %v739_v63, %v791_v46  ;;  %1303 = vrot.lane.b32.xlu1 %v1294_v3, %s2394_s17  ;;  %v2722_v52 = vld [vmem:[#allocation2 + $0x20] ss:$0 sps:$4 sm:$0x11]   ;;  %v1236_v14 = vshll.u32 %v2684_v41, 16  ;;  %v2022_v15 = vcombine.low %v1030_v13, %v2688_v49  ;;  %v1016_v18 = vld [vmem:[#allocation2 + $0x18] sm:$0xe] }
 0x11c   : > { %790 = vst.msk [vmem:[#allocation2 + $0x28] sm:$0xf] %vm770_vm8, %v738_v10  ;;  %793 = vst [vmem:[#allocation2 + $0x2c] sm:$0x1] %v792_v11  ;;  %v1165_v17 = vrot.slane %v2703_v61, 1  ;;  %v1164_v20 = vrot.slane %v2011_v39, 1  ;;  %v2012_v23 = vcombine.low %v1016_v18, %v1007_v8  ;;  %v1419_v28 = vsel %vm1160_vm12, %v1417_v5, %v1418_v7 }
 0x11d   : > { %v2728_v19 = vld [vmem:[#allocation2 + $0x4] sm:$0xf]  ;;  %v964_v21 = vmax.f32 %v960_v2, 0.0  ;;  %v1006_v22 = vld [vmem:[#allocation2 + $0x18] sm:$0xf]  ;;  %v975_v26 = vshrl.u32 %v2082_v16, 16 }
 0x11e   : > { %v1014_v25 = vld [vmem:[#allocation2] sm:$0xe]  ;;  %v978_v27 = vshll.u32 %v2082_v16, 16  ;;  %v1168_v29 = vrot.slane %v2722_v52, 1  ;;  %1429 = vrot.lane.b32.xlu0 %v1419_v28, %s2395_s29  ;;  %v1166_v31 = vsel %vm1160_vm12, %v1164_v20, %v1165_v17  ;;  %v1167_v33 = vrot.slane %v2012_v23, 1 }
 0x11f   : > { %v2732_v30 = vld [vmem:[#allocation2 + $0x8] ss:$0 sps:$4 sm:$0x11]   ;;  %v967_v32 = vmul.f32 %v965_v55, %v964_v21  ;;  %v2010_v34 = vcombine.low %v1014_v25, %v2728_v19  ;;  %v2737_v37 = vld [vmem:[#allocation2 + $0x14] ss:$0 sps:$4 sm:$0x11]   ;;  %1175 = vrot.lane.b32.xlu1 %v1166_v31, %s2396_s18  ;;  %v2740_v40 = vcombine.low %v1006_v22, %v1007_v8 }
 0x120   : > { %v977_v38 = vrot.slane %v975_v26, 7  ;;  %v1162_v42 = vrot.slane %v2732_v30, 1  ;;  %v1289_v43 = vrot.slane %v2022_v15, 1  ;;  %v995_v44 = vld [vmem:[#allocation2 + $0x3c] sm:$0xf]  ;;  %v1169_v46 = vsel %vm1160_vm12, %v1167_v33, %v1168_v29 }
 0x121   : > { %v2083_v45 = vpack.c.bf16 %v967_v32, %v967_v32  ;;  %v1161_v47 = vrot.slane %v2010_v34, 1  ;;  %v1234_v48 = vshrl.u32 %v2684_v41, 16  ;;  %v1290_v51 = vrot.slane %v2737_v37, 1  ;;  %v1004_v63 = vld [vmem:[#allocation2 + $0xc] sm:$0xf] }
 0x122   : > { %v980_v49 = vor.u32 %v978_v27, %v977_v38  ;;  %v1238_v53 = vrot.slane %v1236_v14, 1  ;;  %v1241_v54 = vshll.u32 %v2682_v36, 16  ;;  %1177 = vrot.lane.b32.xlu0 %v1169_v46, %s2396_s18  ;;  %v981_v58 = vrot.slane %v977_v38, 4  ;;  %v999_v5 = vld [vmem:[#allocation2 + $0x44] sm:$0x1] }
 0x123   : > { %v983_v55 = vshrl.u32 %v2083_v45, 16  ;;  %v986_v56 = vshll.u32 %v2083_v45, 16  ;;  %v1163_v57 = vsel %vm1160_vm12, %v1161_v47, %v1162_v42  ;;  %v1350_v36 = vshrl.u32 %v2680_v35, 16  ;;  %v1024_v21 = vld [vmem:[#allocation2 + $0x30] sm:$0xf] }
 0x124   : > { %v996_v59 = vsel %vm2631_vm10, %v980_v49, %v995_v44  ;;  %1173 = vrot.lane.b32.xlu1 %v1163_v57, %s2396_s18  ;;  %v1239_v41 = vor.u32 %v1238_v53, %v1234_v48  ;;  %v1243_v62 = vrot.slane %v1241_v54, 1  ;;  %v1354_v2 = vrot.slane %v1352_v12, 1  ;;  %v1025_v22 = vld [vmem:[#allocation2 + $0x34] sm:$0xf]  ;;  %v1002_v26 = vld [vmem:[#allocation2] sm:$0xf] }
 0x125   : > { %997 = vst [vmem:[#allocation2 + $0x3c] sm:$0xf] %v996_v59  ;;  %v985_v1 = vrot.slane %v983_v55, 7  ;;  %v1357_v3 = vshll.u32 %v2690_v50, 16  ;;  %v2755_v4 = vcombine.low %v1004_v63, %v2701_v60  ;;  %v1291_v7 = vsel %vm1160_vm12, %v1289_v43, %v1290_v51  ;;  %v1033_v27 = vld [vmem:[#allocation2 + $0x30] sm:$0xe] }
 0x126   : > { %v1119_v9 = vshll.u32 %v2740_v40, 16  ;;  %v1124_v8 = vshll.u32 %v2722_v52, 16  ;;  %1301 = vrot.lane.b32.xlu0 %v1291_v7, %s2394_s17  ;;  %v1244_v13 = vsel %vm1091_vm13, %v1239_v41, %v1243_v62  ;;  %v1355_v35 = vor.u32 %v1354_v2, %v1350_v36  ;;  %v1037_v31 = vld [vmem:[#allocation2 + $0x24] sm:$0xf]  ;;  %v2787_v44 = vld [vmem:[#allocation2 + $0x28] sm:$0xf] }
 0x127   : > { %v988_v10 = vor.u32 %v986_v56, %v985_v1  ;;  %v990_v11 = vrot.slane %v985_v1, 4  ;;  %v1224_v12 = vshll.u32 %v2707_v0, 16  ;;  %v1359_v50 = vrot.slane %v1357_v3, 1  ;;  %v2781_v34 = vld [vmem:[#allocation2 + $0x38] ss:$0 sps:$4 sm:$0x11]  }
 0x128   : > { %1271 = vrot.lane.b32.xlu1 %v1244_v13, %s2397_s21  ;;  %v1117_v60 = vshrl.u32 %v2740_v40, 16  ;;  %v1121_v39 = vrot.slane %v1119_v9, 1  ;;  %v1126_v15 = vrot.slane %v1124_v8, 1  ;;  %v1107_v18 = vshll.u32 %v2755_v4, 16  ;;  %v1017_v46 = vld [vmem:[#allocation2 + $0x24] sm:$0xe] }
 0x129   : > { %v989_v14 = vsel %vm2638_vm11, %v981_v58, %v988_v10  ;;  %v1000_v52 = vsel %vm2545_vm4, %v990_v11, %v999_v5  ;;  %v1360_v16 = vsel %vm1091_vm13, %v1355_v35, %v1359_v50  ;;  %v1112_v20 = vshll.u32 %v2703_v61, 16  ;;  %v1009_v47 = vld [vmem:[#allocation2 + $0x28] sm:$0xf]  ;;  %v2798_v49 = vld [vmem:[#allocation2 + $0x2c] ss:$0 sps:$4 sm:$0x11]  }
 0x12a   : > { %998 = vst.msk [vmem:[#allocation2 + $0x40] sm:$0xf] %vm770_vm8, %v989_v14  ;;  %1001 = vst [vmem:[#allocation2 + $0x44] sm:$0x1] %v1000_v52  ;;  %v1122_v17 = vor.u32 %v1121_v39, %v1117_v60  ;;  %1397 = vrot.lane.b32.xlu0 %v1360_v16, %s2398_s19  ;;  %v1105_v6 = vshrl.u32 %v2755_v4, 16  ;;  %v1109_v23 = vrot.slane %v1107_v18, 1  ;;  %v2779_v33 = vcombine.low %v1024_v21, %v1025_v22 }
 0x12b   : > { %v1226_v25 = vrot.slane %v1224_v12, 1  ;;  %v1114_v29 = vrot.slane %v1112_v20, 1  ;;  %v1222_v61 = vshrl.u32 %v2707_v0, 16  ;;  %v1229_v32 = vshll.u32 %v2737_v37, 16  ;;  %v1039_v37 = vld [vmem:[#allocation2 + $0x30] sm:$0xf] }
 0x12c   : > { %v1127_v24 = vsel %vm1091_vm13, %v1122_v17, %v1126_v15  ;;  %v1110_v28 = vor.u32 %v1109_v23, %v1105_v6  ;;  %v2784_v38 = vcombine.low %v1002_v26, %v2728_v19  ;;  %v2025_v42 = vcombine.low %v1033_v27, %v1025_v22  ;;  %v2287_v19 = vld [vmem:[%s3035_s5] sm:$0xff]   ;;  %v2802_v56 = vld [vmem:[#allocation2 + $0x34] sm:$0xf]  ;;  %v1023_v2 = vld [vmem:[#allocation2 + $0x28] sm:$0xf] }
 0x12d   : > { %1144 = vrot.lane.b32.xlu1 %v1127_v24, %s2399_s20  ;;  %v1227_v45 = vor.u32 %v1226_v25, %v1222_v61  ;;  %v1231_v0 = vrot.slane %v1229_v32, 1  ;;  %v2796_v48 = vcombine.low %v1037_v31, %v2787_v44  ;;  %v2013_v51 = vcombine.low %v1017_v46, %v1009_v47  ;;  %2136 = vmatprep.subr.bf16.mxu0 %v2287_v19  ;;  %v1048_v58 = vld [vmem:[#allocation2 + $0x24] sm:$0xe]  ;;  %v2288_v3 = vld [vmem:[%s3035_s5 + $0x8] sm:$0xff]   ;;  %v1041_v13 = vld [vmem:[#allocation2 + $0x3c] sm:$0xf] }
 0x12e   : > { %v1115_v43 = vsel %vm1091_vm13, %v1110_v28, %v1114_v29  ;;  %v1298_v54 = vrot.slane %v2025_v42, 1  ;;  %v1299_v55 = vrot.slane %v2781_v34, 1  ;;  %v1095_v57 = vshll.u32 %v2784_v38, 16  ;;  %v1008_v59 = vld [vmem:[#allocation2 + $0x24] sm:$0xf]  ;;  %2137 = vmatpush3.bf16.msra.mxu0 %v2287_v19 }
 0x12f   : > { %1142 = vrot.lane.b32.xlu0 %v1115_v43, %s2399_s20  ;;  %v1232_v53 = vsel %vm1091_vm13, %v1227_v45, %v1231_v0  ;;  %v1022_v41 = vld [vmem:[#allocation2 + $0x24] sm:$0xf]  ;;  %v1260_v62 = vshll.u32 %v2779_v33, 16  ;;  %v2810_v63 = vcombine.low %v1039_v37, %v2802_v56  ;;  %v1170_v1 = vrot.slane %v2013_v51, 1  ;;  %2138 = vmatprep.subr.bf16.mxu0 %v2288_v3 }
 0x130   : > { %v1171_v36 = vrot.slane %v2798_v49, 1  ;;  %v1300_v5 = vsel %vm1160_vm12, %v1298_v54, %v1299_v55  ;;  %v1093_v7 = vshrl.u32 %v2784_v38, 16  ;;  %v1097_v9 = vrot.slane %v1095_v57, 1  ;;  %v2289_v10 = vld [vmem:[%s3035_s5 + $0x10] ss:$0 sps:$4 sm:$0x33]  }
 0x131   : > { %1207 = vrot.lane.b32.xlu1 %v2779_v33, %s2393_s24  ;;  %v1100_v8 = vshll.u32 %v2732_v30, 16  ;;  %v1032_v11 = vld [vmem:[#allocation2 + $0x24] sm:$0xe]  ;;  %v1364_v35 = vshll.u32 %v2796_v48, 16  ;;  %v2035_v12 = vcombine.low %v1048_v58, %v2787_v44  ;;  %v2827_v50 = vld [vmem:[#allocation2 + $0x40] sm:$0xf]  ;;  %v2829_v30 = vcombine.low %v1008_v59, %v1009_v47 }
 0x132   : > { %v2283_v60 = vld [vmem:[#allocation2 + $0x2c] ss:$0 sps:$4 sm:$0x11]   ;;  %v1172_v39 = vsel %vm1160_vm12, %v1170_v1, %v1171_v36  ;;  %v2832_v14 = vcombine.low %v1022_v41, %v1023_v2  ;;  %v1258_v52 = vshrl.u32 %v2779_v33, 16  ;;  %2139 = vmatpush3.bf16.msra.mxu0 %v2288_v3  ;;  %v1098_v15 = vor.u32 %v1097_v9, %v1093_v7  ;;  %v1049_v41 = vld [vmem:[#allocation2 + $0x30] sm:$0xe] }
 0x133   : > { %1269 = vrot.lane.b32.xlu0 %v1232_v53, %s2397_s21  ;;  %v1102_v16 = vrot.slane %v1100_v8, 1  ;;  %v1262_v17 = vrot.slane %v1260_v62, 1  ;;  %v1265_v18 = vshll.u32 %v2781_v34, 16  ;;  %2161 = vmatprep.subr.msk.bf16.mxu0 %vm586_vm0, %v2289_v10  ;;  %v2024_v20 = vcombine.low %v1032_v11, %v1023_v2  ;;  %v2284_v23 = vld [vmem:[#allocation2 + $0x2c] ss:$0 sps:$4 sm:$0x11]  }
 0x134   : > { %v2029_v21 = vcombine.low %v1041_v13, %v2827_v50  ;;  %v1362_v24 = vshrl.u32 %v2796_v48, 16  ;;  %v1366_v22 = vrot.slane %v1364_v35, 1  ;;  %v1369_v6 = vshll.u32 %v2283_v60, 16  ;;  %v2843_v28 = vld [vmem:[#allocation2 + $0x38] ss:$0 sps:$4 sm:$0x11]  }
 0x135   : > { %1331 = vrot.lane.b32.xlu1 %v2796_v48, %s2392_s28  ;;  %v1376_v25 = vshll.u32 %v2810_v63, 16  ;;  %v1420_v26 = vrot.slane %v2035_v12, 1  ;;  %v1421_v27 = vrot.slane %v2283_v60, 1  ;;  %v1103_v29 = vsel %vm1091_vm13, %v1098_v15, %v1102_v16  ;;  %v2286_v48 = vld [vmem:[#allocation2 + $0x44] ss:$0 sps:$4 sm:$0x11]  }
 0x136   : > { %v1263_v31 = vor.u32 %v1262_v17, %v1258_v52  ;;  %v1267_v61 = vrot.slane %v1265_v18, 1  ;;  %v1131_v32 = vshll.u32 %v2829_v30, 16  ;;  %v1248_v33 = vshll.u32 %v2832_v14, 16  ;;  %v1050_v2 = vld [vmem:[#allocation2 + $0x3c] sm:$0xe] }
 0x137   : > { %1333 = vrot.lane.b32.xlu0 %v2810_v63, %s2392_s28  ;;  %v1388_v34 = vshll.u32 %v2029_v21, 16  ;;  %v1295_v42 = vrot.slane %v2024_v20, 1  ;;  %v1545_v43 = vsel %vm586_vm0, %v2289_v10, 0  ;;  %v1367_v44 = vor.u32 %v1366_v22, %v1362_v24  ;;  %v2290_v20 = vld [vmem:[%s2556_s15 + $0x8] sm:$0xff]   ;;  %v2292_v24 = vld [vmem:[%s2556_s15 + $0x18] sm:$0xff]   ;;  %v2293_v22 = vld [vmem:[%s2556_s15 + $0x10] sm:$0xff]  }
 0x138   : > { %v1371_v45 = vrot.slane %v1369_v6, 1  ;;  %v1296_v46 = vrot.slane %v2284_v23, 1  ;;  %v1136_v0 = vshll.u32 %v2798_v49, 16  ;;  %2141 = vmatpush3.bf16.msra.mxu0 %v1545_v43  ;;  %v1374_v37 = vshrl.u32 %v2810_v63, 16 }
 0x139   : > { %1307 = vrot.lane.b32.xlu1 %v1300_v5, %s2394_s17  ;;  %v1378_v47 = vrot.slane %v1376_v25, 1  ;;  %v1381_v19 = vshll.u32 %v2843_v28, 16  ;;  %v1268_v51 = vsel %vm1091_vm13, %v1263_v31, %v1267_v61  ;;  %v1422_v53 = vsel %vm1160_vm12, %v1420_v26, %v1421_v27 }
 0x13a   : > { %v1129_v54 = vshrl.u32 %v2829_v30, 16  ;;  %v1133_v55 = vrot.slane %v1131_v32, 1  ;;  %v1372_v49 = vsel %vm1091_vm13, %v1367_v44, %v1371_v45  ;;  %v1297_v57 = vsel %vm1160_vm12, %v1295_v42, %v1296_v46 }
 0x13b   : > { %1205 = vrot.lane.b32.xlu0 %v2832_v14, %s2393_s24  ;;  %v1138_v58 = vrot.slane %v1136_v0, 1  ;;  %v1386_v59 = vshrl.u32 %v2029_v21, 16  ;;  %v1379_v62 = vor.u32 %v1378_v47, %v1374_v37  ;;  %v1383_v63 = vrot.slane %v1381_v19, 1 }
 0x13c   : > { %v1390_v1 = vrot.slane %v1388_v34, 1  ;;  %v1393_v36 = vshll.u32 %v2286_v48, 16  ;;  %v1134_v3 = vor.u32 %v1133_v55, %v1129_v54  ;;  %v1246_v5 = vshrl.u32 %v2832_v14, 16 }
 0x13d   : > { %1179 = vrot.lane.b32.xlu1 %v1172_v39, %s2396_s18  ;;  %v1250_v7 = vrot.slane %v1248_v33, 1  ;;  %v1253_v9 = vshll.u32 %v2284_v23, 16  ;;  %v2036_v8 = vcombine.low %v1049_v41, %v2802_v56  ;;  %v2037_v10 = vcombine.low %v1050_v2, %v2827_v50 }
 0x13e   : > { %v1384_v11 = vsel %vm1091_vm13, %v1379_v62, %v1383_v63  ;;  %v1391_v13 = vor.u32 %v1390_v1, %v1386_v59  ;;  %v1139_v35 = vsel %vm1091_vm13, %v1134_v3, %v1138_v58  ;;  %v1395_v12 = vrot.slane %v1393_v36, 1 }
 0x13f   : > { %1140 = vrot.lane.b32.xlu0 %v1103_v29, %s2399_s20  ;;  %v1251_v60 = vor.u32 %v1250_v7, %v1246_v5  ;;  %v1255_v39 = vrot.slane %v1253_v9, 1  ;;  %v1426_v14 = vrot.slane %v2037_v10, 1  ;;  %v1427_v52 = vrot.slane %v2286_v48, 1 }
 0x140   : > { %v1396_v56 = vsel %vm1091_vm13, %v1391_v13, %v1395_v12  ;;  %v1423_v15 = vrot.slane %v2036_v8, 1  ;;  %v1424_v16 = vrot.slane %v2843_v28, 1  ;;  %vm1463_vm0 = vcmask 130048  }
 0x141   : > { %1335 = vrot.lane.b32.xlu1 %v2029_v21, %s2392_s28  ;;  %v1256_v50 = vsel %vm1091_vm13, %v1251_v60, %v1255_v39  ;;  %v1428_v17 = vsel %vm1160_vm12, %v1426_v14, %v1427_v52  ;;  %v2291_v21 = vld [vmem:[%s2556_s15] sm:$0xff]   ;;  %vm1499_vm4 = vcmask 261120   ;;  %s2400_s28 = smov [#allocation3]  }
 0x142   : > { %v1425_v18 = vsel %vm1160_vm12, %v1423_v15, %v1424_v16  ;;  %s2298_s24 = sshll.u32 %s2400_s28, 4  ;;  %s2299_s24 = int_to_ptr.vmem [resolvable:$false] %s2298_s24 }
 0x143   : > { %1431 = vrot.lane.b32.xlu0 %v1422_v53, %s2395_s29 }
 0x145   : > { %1275 = vrot.lane.b32.xlu1 %v1268_v51, %s2397_s21 }
 0x147   : > { %1305 = vrot.lane.b32.xlu0 %v1297_v57, %s2394_s17  ;;  %s440_s17 = sand.u32 1, %s2364_s10  }
 0x148   : > { %s2977_s15 = scalar_lea.sflag [#allocation4], %s440_s17 }
 0x149   : > { %1399 = vrot.lane.b32.xlu1 %v1372_v49, %s2398_s19 }
 0x14b   : > { %1401 = vrot.lane.b32.xlu0 %v1384_v11, %s2398_s19 }
 0x14d   : > { %1146 = vrot.lane.b32.xlu1 %v1139_v35, %s2399_s20 }
 0x14f   : > { %1273 = vrot.lane.b32.xlu0 %v1256_v50, %s2397_s21  ;;  %s1953_s21 = sshll.u32 %s440_s17, 5 }
 0x151   : > { %1403 = vrot.lane.b32.xlu1 %v1396_v56, %s2398_s19  ;;  %s2947_s19 = scalar_lea.vmem [#allocation3], %s1953_s21 }
 0x152   : > { %s1815_s14 = sshll.u32 %s2947_s19, 4  ;;  %s2962_s14 = int_to_ptr.vmem [resolvable:$true] %s1815_s14 }
 0x153   : > { %1433 = vrot.lane.b32.xlu0 %v1425_v18, %s2395_s29  ;;  %s2294_s26 = scalar_lea.vmem %s2962_s14, 512  ;;  %p2301_p10 = scmp.lt.s32.totalorder %s2962_s14, %s2299_s24 }
 0x154   : > { %p2295_p6 = scmp.ne.s32.totalorder %s2962_s14, %s2294_s26 }
 0x155   : > { %1435 = vrot.lane.b32.xlu1 %v1428_v17, %s2395_s29  ;;  %s2300_s29 = scalar_lea.vmem %s2299_s24, 1024 }
 0x156   : > { %p2296_p7 = pnand %p2295_p6, %p2503_p3  ;;  %p2302_p11 = scmp.lt.s32.totalorder %s2300_s29, %s2294_s26 }
 0x157   : > { %1644 = vrot.lane.b32.xlu0 %v2291_v21, %s2399_s20 }
 0x158   : > { %p2297_p9 = pneg %p2296_p7  ;;  %p2303_p12 = por %p2302_p11, %p2301_p10 }
 0x159   : > { %1646 = vrot.lane.b32.xlu1 %v2290_v20, %s2399_s20 }
 0x15a   : > { %p2304_p13 = pnand %p2303_p12, %p2297_p9 }
 0x15b   : > { %1648 = vrot.lane.b32.xlu0 %v2293_v22, %s2399_s20 }
 0x15d   : > { %1650 = vrot.lane.b32.xlu1 %v2292_v24, %s2399_s20 }
 0x187   : > { %v1330_v6 = vpop.permute.xlu0 %1329  ;;  %v1204_v23 = vpop.permute.xlu1 %1203 }
 0x18c   : > { %v1202_v26 = vpop.permute.xlu0 %1201 }
 0x18d   : > { %v1304_v25 = vpop.permute.xlu1 %1303 }
 0x190   : > { %v1430_v27 = vpop.permute.xlu0 %1429 }
 0x191   : > { %v1176_v28 = vpop.permute.xlu1 %1175 }
 0x194   : > { %v1178_v29 = vpop.permute.xlu0 %1177 }
 0x196   : > { %v1174_v31 = vpop.permute.xlu1 %1173 }
 0x198   : > { %v1302_v61 = vpop.permute.xlu0 %1301 }
 0x19a   : > { %v1272_v32 = vpop.permute.xlu1 %1271 }
 0x19c   : > { %v1398_v33 = vpop.permute.xlu0 %1397 }
 0x19f   : > { %v1145_v34 = vpop.permute.xlu1 %1144 }
 0x1a0   : > { %v1442_v8 = vsel %vm573_vm5, %v2740_v40, %v1145_v34 }
 0x1a1   : > { %v1143_v43 = vpop.permute.xlu0 %1142  ;;  %v1451_v12 = vsel %vm1445_vm14, %v1442_v8, %v1178_v29 }
 0x1a2   : > { %v1440_v37 = vsel %vm573_vm5, %v2755_v4, %v1143_v43 }
 0x1a3   : > { %v1208_v42 = vpop.permute.xlu1 %1207  ;;  %v1449_v47 = vsel %vm1445_vm14, %v1440_v37, %v1176_v28 }
 0x1a4   : > { %v1458_v51 = vsel %vm1454_vm15, %v1449_v47, %v1204_v23 }
 0x1a5   : > { %v1270_v45 = vpop.permute.xlu0 %1269  ;;  %v1467_v49 = vsel %vm1463_vm0, %v1458_v51, %v1272_v32 }
 0x1a6   : > { %v1476_v62 = vsel %vm1472_vm1, %v1467_v49, %v1304_v25  ;;  %v2038_v25 = vld [vmem:[%s3036_s6] ss:$0 sm:$0xff] }
 0x1a7   : > { %v1332_v44 = vpop.permute.xlu1 %1331 }
 0x1a8   : > { %v1485_v36 = vsel %vm1481_vm3, %v1476_v62, %v1332_v44 }
 0x1a9   : > { %v1334_v0 = vpop.permute.xlu0 %1333 }
 0x1ab   : > { %v1308_v46 = vpop.permute.xlu1 %1307 }
 0x1ad   : > { %v1206_v48 = vpop.permute.xlu0 %1205 }
 0x1ae   : > { %v1460_v39 = vsel %vm1454_vm15, %v1451_v12, %v1206_v48 }
 0x1af   : > { %v1180_v19 = vpop.permute.xlu1 %1179 }
 0x1b1   : > { %v1141_v54 = vpop.permute.xlu0 %1140 }
 0x1b2   : > { %v1438_v55 = vsel %vm573_vm5, %v2784_v38, %v1141_v54 }
 0x1b3   : > { %v1336_v53 = vpop.permute.xlu1 %1335  ;;  %v1447_v57 = vsel %vm1445_vm14, %v1438_v55, %v1174_v31 }
 0x1b4   : > { %v1456_v4 = vsel %vm1454_vm15, %v1447_v57, %v1202_v26 }
 0x1b5   : > { %v1465_v58 = vsel %vm1463_vm0, %v1456_v4, %v1270_v45  ;;  %v1432_v41 = vpop.permute.xlu0 %1431 }
 0x1b6   : > { %v1474_v63 = vsel %vm1472_vm1, %v1465_v58, %v1302_v61 }
 0x1b7   : > { %v1276_v59 = vpop.permute.xlu1 %1275  ;;  %v1483_v38 = vsel %vm1481_vm3, %v1474_v63, %v1330_v6  ;;  %v1664_v6 = vld [vmem:[%s3037_s7] sm:$0xf] }
 0x1b8   : > { %v1492_v1 = vsel %vm1490_vm2, %v1483_v38, %v1398_v33  ;;  %2162 = vmatprep.subr.msk.bf16.mxu1 %vm1680_vm7, %v1664_v6  ;;  %v1682_v23 = vsel %vm1680_vm7, %v1664_v6, 0 }
 0x1b9   : > { %v1306_v3 = vpop.permute.xlu0 %1305  ;;  %v1501_v5 = vsel %vm1499_vm4, %v1492_v1, %v1430_v27  ;;  %2151 = vmatpush3.bf16.msra.mxu1 %v1682_v23 }
 0x1ba   : > { %2142 = vmatprep.mubr.msk.bf16.mxu0 %vm1535_vm6, %v1501_v5  ;;  %v2050_v5 = vld [vmem:[%s3038_s8] ss:$0 sm:$0xff] }
 0x1bb   : > { %v1400_v2 = vpop.permute.xlu1 %1399 }
 0x1bc   : > { %v1494_v7 = vsel %vm1490_vm2, %v1485_v36, %v1400_v2 }
 0x1bd   : > { %v1503_v9 = vsel %vm1499_vm4, %v1494_v7, %v1432_v41  ;;  %v1402_v11 = vpop.permute.xlu0 %1401 }
 0x1be   : > { %2143 = vmatmul.mubr.msk.bf16.vlgmr.msra.gmra.mrb[8].mxu0 %vm1535_vm6, %v1503_v9 }
 0x1bf   : > { %v1147_v10 = vpop.permute.xlu1 %1146 }
 0x1c0   : > { %v1444_v13 = vsel %vm573_vm5, %v2829_v30, %v1147_v10 }
 0x1c1   : > { %v1453_v35 = vsel %vm1445_vm14, %v1444_v13, %v1180_v19  ;;  %v1274_v56 = vpop.permute.xlu0 %1273 }
 0x1c2   : > { %v1462_v60 = vsel %vm1454_vm15, %v1453_v35, %v1208_v42  ;;  %v1469_v40 = vsel %vm1463_vm0, %v1460_v39, %v1274_v56 }
 0x1c3   : > { %v1471_v14 = vsel %vm1463_vm0, %v1462_v60, %v1276_v59  ;;  %v1404_v52 = vpop.permute.xlu1 %1403  ;;  %v1478_v30 = vsel %vm1472_vm1, %v1469_v40, %v1306_v3 }
 0x1c4   : > { %v1480_v50 = vsel %vm1472_vm1, %v1471_v14, %v1308_v46  ;;  %v1487_v17 = vsel %vm1481_vm3, %v1478_v30, %v1334_v0 }
 0x1c5   : > { %v1489_v15 = vsel %vm1481_vm3, %v1480_v50, %v1336_v53  ;;  %v1496_v20 = vsel %vm1490_vm2, %v1487_v17, %v1402_v11  ;;  %v1434_v21 = vpop.permute.xlu0 %1433 }
 0x1c6   : > { %v1498_v16 = vsel %vm1490_vm2, %v1489_v15, %v1404_v52  ;;  %v1505_v22 = vsel %vm1499_vm4, %v1496_v20, %v1434_v21 }
 0x1c7   : > { %v1436_v18 = vpop.permute.xlu1 %1435  ;;  %2146 = vmatprep.mubr.msk.bf16.mxu0 %vm1535_vm6, %v1505_v22 }
 0x1c8   : > { %v1507_v24 = vsel %vm1499_vm4, %v1498_v16, %v1436_v18 }
 0x1c9   : > { %2147 = vmatmul.mubr.msk.bf16.gmra.mrb[12].mxu0 %vm1535_vm6, %v1507_v24  ;;  %v1645_v46 = vpop.permute.xlu0 %1644 }
 0x1cb   : > { %v1647_v37 = vpop.permute.xlu1 %1646 }
 0x1cd   : > { %v1649_v38 = vpop.permute.xlu0 %1648 }
 0x1cf   : > { %v1651_v36 = vpop.permute.xlu1 %1650 }
 0x291   : > { %v2144_v26 = vpop.f32.mrb[8].mxu0 }
 0x292   : > { %v1590_v27 = vadd.f32 %v2144_v26, %v2038_v25  ;;  %v1581_v28 = vpop.f32.mrb[9].mxu0 }
 0x293   : > { %v1582_v29 = vadd.f32 %v2038_v25, %v1581_v28  ;;  %v2145_v31 = vpop.f32.mrb[10].mxu0 }
 0x294   : > { %v1593_v61 = vadd.f32 %v2145_v31, %v2038_v25  ;;  %v1584_v32 = vpop.f32.mrb[11].mxu0  ;;  %v1614_v34 = vmax.f32 %v1590_v27, 0.0 }
 0x295   : > { %v1585_v33 = vadd.f32 %v2038_v25, %v1584_v32  ;;  %v1612_v43 = vmax.f32 %v1582_v29, 0.0 }
 0x296   : > { %v1615_v42 = vmax.f32 %v1593_v61, 0.0 }
 0x297   : > { %v1613_v44 = vmax.f32 %v1585_v33, 0.0 }
 0x298   : > { %v1621_v45 = vpack.c.bf16 %v1615_v42, %v1614_v34 }
 0x299   : > { %v1620_v0 = vpack.c.bf16 %v1613_v44, %v1612_v43 }
 0x29a   : > { %v1657_v19 = vsel %vm573_vm5, %v1621_v45, %v1647_v37 }
 0x29b   : > { %v1654_v47 = vsel %vm573_vm5, %v1620_v0, %v1645_v46 }
 0x29c   : > { %2152 = vmatprep.mubr.msk.bf16.mxu1 %vm1445_vm14, %v1654_v47  ;;  %v2148_v48 = vpop.f32.mrb[12].mxu0 }
 0x29d   : > { %2153 = vmatmul.mubr.msk.bf16.vlgmr.msra.gmra.mrb[8].mxu1 %vm1445_vm14, %v1657_v19  ;;  %v1606_v51 = vadd.f32 %v2148_v48, %v2038_v25  ;;  %v1597_v53 = vpop.f32.mrb[13].mxu0 }
 0x29e   : > { %v1598_v54 = vadd.f32 %v2038_v25, %v1597_v53  ;;  %v2149_v55 = vpop.f32.mrb[14].mxu0 }
 0x29f   : > { %v1609_v49 = vadd.f32 %v2149_v55, %v2038_v25  ;;  %v1600_v57 = vpop.f32.mrb[15].mxu0  ;;  %v1618_v58 = vmax.f32 %v1606_v51, 0.0 }
 0x2a0   : > { %v1601_v4 = vadd.f32 %v2038_v25, %v1600_v57  ;;  %v1616_v41 = vmax.f32 %v1598_v54, 0.0 }
 0x2a1   : > { %v1619_v59 = vmax.f32 %v1609_v49, 0.0 }
 0x2a2   : > { %v1617_v62 = vmax.f32 %v1601_v4, 0.0 }
 0x2a3   : > { %v1623_v63 = vpack.c.bf16 %v1619_v59, %v1618_v58 }
 0x2a4   : > { %v1622_v1 = vpack.c.bf16 %v1617_v62, %v1616_v41 }
 0x2a5   : > { %v1663_v3 = vsel %vm573_vm5, %v1623_v63, %v1651_v36 }
 0x2a6   : > { %v1660_v2 = vsel %vm573_vm5, %v1622_v1, %v1649_v38  ;;  %vm1789_vm5 = vcmask 125952  }
 0x2a7   : > { %2156 = vmatprep.mubr.msk.bf16.mxu1 %vm1445_vm14, %v1660_v2 }
 0x2a8   : > { %2157 = vmatmul.mubr.msk.bf16.gmra.mrb[12].mxu1 %vm1445_vm14, %v1663_v3 }
 0x370   : > { %v2154_v7 = vpop.f32.mrb[8].mxu1 }
 0x371   : > { %v1727_v9 = vadd.f32 %v2154_v7, %v2050_v5  ;;  %v1718_v8 = vpop.f32.mrb[9].mxu1 }
 0x372   : > { %v1719_v10 = vadd.f32 %v2050_v5, %v1718_v8  ;;  %v2155_v11 = vpop.f32.mrb[10].mxu1 }
 0x373   : > { %v1751_v13 = vmax.f32 %v1727_v9, 0.0  ;;  %v1730_v35 = vadd.f32 %v2155_v11, %v2050_v5  ;;  %v1721_v12 = vpop.f32.mrb[11].mxu1 }
 0x374   : > { %v1749_v60 = vmax.f32 %v1719_v10, 0.0  ;;  %v1722_v39 = vadd.f32 %v2050_v5, %v1721_v12 }
 0x375   : > { %v2086_v14 = vpack.c.bf16 %v1751_v13, %v1751_v13  ;;  %v1752_v52 = vmax.f32 %v1730_v35, 0.0 }
 0x376   : > { %v2084_v56 = vpack.c.bf16 %v1749_v60, %v1749_v60  ;;  %v1750_v50 = vmax.f32 %v1722_v39, 0.0 }
 0x377   : > { %1792 = vst.msk [vmem:[%s2947_s19 + $0x8] sm:$0xf] %vm1789_vm5, %v2086_v14  ;;  %v2087_v40 = vpack.c.bf16 %v1752_v52, %v1752_v52 }
 0x378   : > { %1790 = vst.msk [vmem:[%s2947_s19] sm:$0xf] %vm1789_vm5, %v2084_v56  ;;  %v2085_v15 = vpack.c.bf16 %v1750_v50, %v1750_v50 }
 0x379   : > { %1793 = vst.msk [vmem:[%s2947_s19 + $0xc] sm:$0xf] %vm1789_vm5, %v2087_v40 }
 0x37a   : > { %1791 = vst.msk [vmem:[%s2947_s19 + $0x4] sm:$0xf] %vm1789_vm5, %v2085_v15 }
 0x37b   : > { %v2158_v30 = vpop.f32.mrb[12].mxu1 }
 0x37c   : > { %v1743_v16 = vadd.f32 %v2158_v30, %v2050_v5  ;;  %v1734_v17 = vpop.f32.mrb[13].mxu1 }
 0x37d   : > { %v1735_v18 = vadd.f32 %v2050_v5, %v1734_v17  ;;  %v2159_v20 = vpop.f32.mrb[14].mxu1 }
 0x37e   : > { %v1755_v21 = vmax.f32 %v1743_v16, 0.0  ;;  %v1746_v24 = vadd.f32 %v2159_v20, %v2050_v5  ;;  %v1737_v22 = vpop.f32.mrb[15].mxu1 }
 0x37f   : > { %v1753_v6 = vmax.f32 %v1735_v18, 0.0  ;;  %v1738_v23 = vadd.f32 %v2050_v5, %v1737_v22 }
 0x380   : > { %v2090_v25 = vpack.c.bf16 %v1755_v21, %v1755_v21  ;;  %v1756_v26 = vmax.f32 %v1746_v24, 0.0 }
 0x381   : > { %v2088_v27 = vpack.c.bf16 %v1753_v6, %v1753_v6  ;;  %v1754_v28 = vmax.f32 %v1738_v23, 0.0 }
 0x382   : > { %1796 = vst.msk [vmem:[%s2947_s19 + $0x18] sm:$0xf] %vm1789_vm5, %v2090_v25  ;;  %v2091_v29 = vpack.c.bf16 %v1756_v26, %v1756_v26 }
 0x383   : > { %1794 = vst.msk [vmem:[%s2947_s19 + $0x10] sm:$0xf] %vm1789_vm5, %v2088_v27  ;;  %v2089_v31 = vpack.c.bf16 %v1754_v28, %v1754_v28 }
 0x384   : > { %1797 = vst.msk [vmem:[%s2947_s19 + $0x1c] sm:$0xf] %vm1789_vm5, %v2091_v29 }
 0x385   : > { %1795 = vst.msk [vmem:[%s2947_s19 + $0x14] sm:$0xf] %vm1789_vm5, %v2089_v31 }
 0x386   : > { %2307 = shalt.err (!%p2304_p13)
}
 0x387   : > { %s2308_s17 = scalar_lea.hbm %s2969_s27, 512  ;;  %s2312_s19 = scalar_lea.hbm %s3039_s9, 4096 }
 0x388   : > { %p2309_p0 = scmp.ne.s32.totalorder %s2969_s27, %s2308_s17  ;;  %p2313_p4 = scmp.lt.u32.totalorder %s2969_s27, %s3039_s9 }
 0x389   : > { %p2314_p5 = scmp.lt.u32.totalorder %s2312_s19, %s2308_s17  ;;  %p2316_p7 = scmp.lt.u32.totalorder %s2308_s17, %s2969_s27 }
 0x38a   : > { %p2310_p1 = pnand %p2309_p0, %p2503_p3 }
 0x38b   : > { %p2315_p6 = por %p2314_p5, %p2313_p4 }
 0x38c   : > { %p2311_p2 = pneg %p2310_p1 }
 0x38d   : > { %p2317_p9 = por %p2316_p7, %p2315_p6 }
 0x38f   : > { %p2318_p10 = pnand %p2317_p9, %p2311_p2 }
 0x391   : > { %2321 = shalt.err (!%p2318_p10)
}
 0x392   : > { %s2401_s11 = smov 64  }
 0x393   : > { %2163 = dma.vmem_to_hbm [thread:$0]  (%p2503_p3), %s2962_s14, 512, %s2969_s27, %s2977_s15, %s2401_s11, %s2401_s11, %s2399_s20  }
 0x394 PF: > { %p2169_p11 = scmp.ge.s32.totalorder %s2388_s16, 2  ;;  %s1830_s13 = sand.u32 1, %s2360_s30  }
 0x395   : > { %s1831_s23 = scalar_lea.sflag [#allocation4], %s1830_s13 }
 0x396   : > { %p2166_p12 = pnand %p2169_p11, %p2512_p8 }
 0x398   : > { %2355 = dma.done.wait (!%p2166_p12), %s1831_s23, 512  }
 0x399   : > { %2357 = vsyncadd (!%p2166_p12), %s1831_s23, 4294966784  ;;  %s22_s16 = sadd.s32 1, %s2388_s16   ;;  %s3067_s22 = sld [smem:[#allocation6_spill]] }
 0x39a   : > { %p19_p13 = scmp.ge.s32.totalorder %s22_s16, 10   ;;  %s3068_s11 = sld [smem:[#allocation12_spill]] }
 0x39b   : > { %s3069_s12 = sld [smem:[#allocation7_spill]]  ;;  %s3070_s13 = sld [smem:[#allocation8_spill]] }
 0x39c   : > { %s3071_s14 = sld [smem:[#allocation9_spill]]  ;;  %s3072_s15 = sld [smem:[#allocation10_spill]] }
 0x39d   : > { %s3073_s30 = smov %s2364_s10  ;;  %21 = sbr.rel (!%p19_p13) target bundleno = 7 (0x7), region = 100 }
 0x39f   : > { %s3074_s10 = smov %s3067_s22 }
 0x3a4   :  { %1836 = vsyncpa [#allocation4], 1 }
 0x3a5   :  { %1838 = vsyncpa [#allocation4 + $0x1], 1 }

</bundles_post_ra>
